<compile_context>
chip_gen: v7x
topology: tpu7x:2x2x1
jax: 0.10.0
libtpu: 0.0.40
codegen_flags: <defaults>
</compile_context>

<pallas_src>
import functools

import jax
import jax.numpy as jnp
from jax.experimental import pallas as pl
from jax.experimental.pallas import tpu as pltpu


def _attention_kernel(x_ref, wqkv_ref, wout_ref, bout_ref, o_ref, *,
                      heads, dim_head, scale, matmul_dtype):
    tb, n, dim = x_ref.shape
    inner = heads * dim_head

    # (tb, n, dim) -> (tb*n, dim): merges leading dims only (layout no-op when
    # n is a sublane multiple, as here with n == 8).
    x_tok = x_ref[...].reshape(tb * n, dim)

    # Fused QKV projection: one MXU-shaped matmul per grid step.
    qkv = jnp.dot(x_tok.astype(matmul_dtype),
                  wqkv_ref[...].astype(matmul_dtype),
                  preferred_element_type=jnp.float32)            # (tb*n, 3*inner)

    qkv3 = qkv.reshape(tb, n, 3 * inner)                          # leading-dim split

    # Per-head attention, batched over tb.  `heads` is a small static python
    # int -> unrolled.  The output projection is folded per head, so no
    # concatenate across heads is needed.
    proj = jnp.zeros((tb * n, dim), dtype=jnp.float32)
    for h in range(heads):
        q = qkv3[:, :, h * dim_head:(h + 1) * dim_head] * scale               # (tb,n,d)
        k = qkv3[:, :, inner + h * dim_head:inner + (h + 1) * dim_head]        # (tb,n,d)
        v = qkv3[:, :, 2 * inner + h * dim_head:2 * inner + (h + 1) * dim_head]

        dots = jnp.einsum('bnd,bmd->bnm',
                          q.astype(matmul_dtype), k.astype(matmul_dtype),
                          preferred_element_type=jnp.float32)     # (tb, n, n)

        # Softmax in f32 (numerically stable, v5e-friendly).
        dots = dots - jnp.max(dots, axis=-1, keepdims=True)
        p = jnp.exp(dots)
        attn = p * pl.reciprocal(jnp.sum(p, axis=-1, keepdims=True), approx=True)

        oh = jnp.einsum('bnm,bmd->bnd',
                        attn.astype(matmul_dtype), v.astype(matmul_dtype),
                        preferred_element_type=jnp.float32)       # (tb, n, d)

        wout_h = wout_ref[h * dim_head:(h + 1) * dim_head, :].astype(matmul_dtype)
        proj = proj + jnp.dot(oh.reshape(tb * n, dim_head).astype(matmul_dtype),
                              wout_h, preferred_element_type=jnp.float32)

    # to_out bias fused in-kernel.
    proj = proj + bout_ref[...].astype(jnp.float32)               # (1, dim) broadcast
    o_ref[...] = proj.reshape(tb, n, dim).astype(o_ref.dtype)


def attention_pallas(x, w_qkv, w_out, b_out, *, heads, dim_head,
                     block_b=256, matmul_dtype=None):
    """x: (b, p, t, n, dim). Returns (b, p, t, n, dim)."""
    b, p, t, n, dim = x.shape
    inner = heads * dim_head
    scale = dim_head ** -0.5
    if matmul_dtype is None:
        # bf16 MXU path if the caller already supplies bf16 activations
        # (recommended on v6e/v7x); otherwise keep exact f32.
        matmul_dtype = jnp.bfloat16 if x.dtype == jnp.bfloat16 else jnp.float32

    B = b * p * t
    tb = min(block_b, B)
    Bp = ((B + tb - 1) // tb) * tb

    xf = x.reshape(B, n, dim)
    if Bp != B:
        xf = jnp.pad(xf, ((0, Bp - B), (0, 0), (0, 0)))

    b_out2d = b_out.reshape(1, dim)

    kernel = functools.partial(
        _attention_kernel, heads=heads, dim_head=dim_head, scale=scale,
        matmul_dtype=matmul_dtype)

    out = pl.pallas_call(
        kernel,
        out_shape=jax.ShapeDtypeStruct((Bp, n, dim), x.dtype),
        grid_spec=pltpu.PrefetchScalarGridSpec(
            num_scalar_prefetch=0,
            grid=(Bp // tb,),
            in_specs=[
                pl.BlockSpec((tb, n, dim), lambda i: (i, 0, 0)),
                pl.BlockSpec((dim, 3 * inner), lambda i: (0, 0)),
                pl.BlockSpec((inner, dim), lambda i: (0, 0)),
                pl.BlockSpec((1, dim), lambda i: (0, 0)),
            ],
            out_specs=pl.BlockSpec((tb, n, dim), lambda i: (i, 0, 0)),
        ),
        compiler_params=pltpu.CompilerParams(
            dimension_semantics=("parallel",)),
    )(xf, w_qkv, w_out, b_out2d)

    if Bp != B:
        out = out[:B]
    return out.reshape(b, p, t, n, dim)


def attention_reference(x, w_qkv, w_out, b_out, *, heads, dim_head):
    """Pure-JAX reference mirroring the PyTorch forward."""
    b, p, t, n, dim = x.shape
    inner = heads * dim_head
    scale = dim_head ** -0.5
    qkv = jnp.einsum('bptnd,de->bptne', x, w_qkv)
    q, k, v = jnp.split(qkv, 3, axis=-1)

    def to_heads(a):  # 'b p t n (h d) -> b p t h n d'
        return a.reshape(b, p, t, n, heads, dim_head).transpose(0, 1, 2, 4, 3, 5)

    q, k, v = map(to_heads, (q, k, v))
    dots = jnp.einsum('bpthnd,bpthmd->bpthnm', q, k) * scale
    attn = jax.nn.softmax(dots, axis=-1)
    out = jnp.einsum('bpthnm,bpthmd->bpthnd', attn, v)
    out = out.transpose(0, 1, 2, 4, 3, 5).reshape(b, p, t, n, inner)
    return jnp.einsum('bptni,id->bptnd', out, w_out) + b_out


if __name__ == "__main__":
    # Small shapes consistent with the 5-D forward: (b, p, t, n, dim)
    b, p, t, n = 2, 2, 2, 8
    dim = 32
    heads = 4
    dim_head = 16
    inner = heads * dim_head

    key = jax.random.PRNGKey(0)
    kx, kq, ko, kb = jax.random.split(key, 4)

    x = jax.random.normal(kx, (b, p, t, n, dim), dtype=jnp.float32)
    # PyTorch Linear stores weight as (out, in); here we keep the transposed
    # (in, out) layout used directly in the matmuls.
    w_qkv = jax.random.normal(kq, (dim, 3 * inner), dtype=jnp.float32) * 0.05
    w_out = jax.random.normal(ko, (inner, dim), dtype=jnp.float32) * 0.05
    b_out = jax.random.normal(kb, (dim,), dtype=jnp.float32) * 0.05

    y = attention_pallas(x, w_qkv, w_out, b_out, heads=heads, dim_head=dim_head)
    y = jax.block_until_ready(y)

    y_ref = attention_reference(x, w_qkv, w_out, b_out, heads=heads, dim_head=dim_head)
    assert y.shape == (b, p, t, n, dim)
    # Tolerance allows for the approximate (EUP vrcp) softmax reciprocal.
    assert jnp.allclose(y, y_ref, atol=2e-3, rtol=2e-3), "mismatch vs reference"

    print("KERNEL_OK")
</pallas_src>

<mosaic_0001>
module attributes {stable_mosaic.version = 11 : i64} {
  func.func @_attention_kernel(%arg0: i32, %arg1: memref<8x8x32xf32, #tpu.memory_space<vmem>>, %arg2: memref<32x192xf32, #tpu.memory_space<vmem>>, %arg3: memref<64x32xf32, #tpu.memory_space<vmem>>, %arg4: memref<1x32xf32, #tpu.memory_space<vmem>>, %arg5: memref<8x8x32xf32, #tpu.memory_space<vmem>>) attributes {dimension_semantics = [#tpu.dimension_semantics<parallel>], iteration_bounds = array<i64: 1>, scalar_prefetch = 0 : i64, scratch_operands = 0 : i64, tpu.core_type = #tpu.core_type<tc>, window_params = [{transform_indices = @transform_0, window_bounds = array<i64: 8, 8, 32>}, {pipeline_mode = #tpu.pipeline_mode<synchronous>, transform_indices = @transform_1, window_bounds = array<i64: 32, 192>}, {pipeline_mode = #tpu.pipeline_mode<synchronous>, transform_indices = @transform_2, window_bounds = array<i64: 64, 32>}, {pipeline_mode = #tpu.pipeline_mode<synchronous>, transform_indices = @transform_3, window_bounds = array<i64: 1, 32>}, {transform_indices = @transform_4, window_bounds = array<i64: 8, 8, 32>}]} {
    %c0 = arith.constant 0 : index
    %c0_0 = arith.constant 0 : index
    %c0_1 = arith.constant 0 : index
    %0 = vector.load %arg1[%c0, %c0_0, %c0_1] : memref<8x8x32xf32, #tpu.memory_space<vmem>>, vector<8x8x32xf32>
    %1 = vector.shape_cast %0 : vector<8x8x32xf32> to vector<64x32xf32>
    %c0_2 = arith.constant 0 : index
    %c0_3 = arith.constant 0 : index
    %2 = vector.load %arg2[%c0_2, %c0_3] : memref<32x192xf32, #tpu.memory_space<vmem>>, vector<32x192xf32>
    %cst = arith.constant dense<0.000000e+00> : vector<64x192xf32>
    %3 = tpu.matmul %1, %2, %cst {dimension_numbers = #tpu.dot_dimension_numbers<[1], [0], [0], [1], [0, 0, 1, 1], [], []>} : vector<64x32xf32>, vector<32x192xf32>, vector<64x192xf32> -> vector<64x192xf32>
    %4 = vector.shape_cast %3 : vector<64x192xf32> to vector<8x8x192xf32>
    %cst_4 = arith.constant 0.000000e+00 : f32
    %5 = vector.broadcast %cst_4 : f32 to vector<64x32xf32>
    %6 = vector.extract_strided_slice %4 {offsets = [0, 0, 0], sizes = [8, 8, 16], strides = [1, 1, 1]} : vector<8x8x192xf32> to vector<8x8x16xf32>
    %cst_5 = arith.constant 2.500000e-01 : f32
    %7 = vector.broadcast %cst_5 : f32 to vector<8x8x16xf32>
    %8 = arith.mulf %6, %7 : vector<8x8x16xf32>
    %9 = vector.extract_strided_slice %4 {offsets = [0, 0, 64], sizes = [8, 8, 16], strides = [1, 1, 1]} : vector<8x8x192xf32> to vector<8x8x16xf32>
    %10 = vector.extract_strided_slice %4 {offsets = [0, 0, 128], sizes = [8, 8, 16], strides = [1, 1, 1]} : vector<8x8x192xf32> to vector<8x8x16xf32>
    "tpu.trace_start"() <{level = 10 : i32, message = "bnd,bmd->bnm"}> : () -> ()
    %cst_6 = arith.constant dense<0.000000e+00> : vector<8x8x8xf32>
    %11 = tpu.matmul %8, %9, %cst_6 {dimension_numbers = #tpu.dot_dimension_numbers<[2], [2], [1], [1], [0, 0, 0, 1, 1, 1], [0], [0]>} : vector<8x8x16xf32>, vector<8x8x16xf32>, vector<8x8x8xf32> -> vector<8x8x8xf32>
    "tpu.trace_stop"() : () -> ()
    %cst_7 = arith.constant dense<0xFF800000> : vector<8x8xf32>
    %12 = vector.multi_reduction <maximumf>, %11, %cst_7 [2] : vector<8x8x8xf32> to vector<8x8xf32>
    %13 = vector.shape_cast %12 : vector<8x8xf32> to vector<8x8x1xf32>
    %14 = vector.broadcast %13 : vector<8x8x1xf32> to vector<8x8x8xf32>
    %15 = arith.subf %11, %14 : vector<8x8x8xf32>
    %16 = math.exp %15 : vector<8x8x8xf32>
    %cst_8 = arith.constant dense<0.000000e+00> : vector<8x8xf32>
    %17 = vector.multi_reduction <add>, %16, %cst_8 [2] : vector<8x8x8xf32> to vector<8x8xf32>
    %18 = vector.shape_cast %17 : vector<8x8xf32> to vector<8x8x1xf32>
    %19 = tpu.reciprocal %18 {approx = true} : vector<8x8x1xf32> -> vector<8x8x1xf32>
    %20 = vector.broadcast %19 : vector<8x8x1xf32> to vector<8x8x8xf32>
    %21 = arith.mulf %16, %20 : vector<8x8x8xf32>
    "tpu.trace_start"() <{level = 10 : i32, message = "bnm,bmd->bnd"}> : () -> ()
    %cst_9 = arith.constant dense<0.000000e+00> : vector<8x8x16xf32>
    %22 = tpu.matmul %21, %10, %cst_9 {dimension_numbers = #tpu.dot_dimension_numbers<[2], [1], [1], [2], [0, 0, 0, 1, 1, 2], [0], [0]>} : vector<8x8x8xf32>, vector<8x8x16xf32>, vector<8x8x16xf32> -> vector<8x8x16xf32>
    "tpu.trace_stop"() : () -> ()
    %c0_10 = arith.constant 0 : index
    %c0_11 = arith.constant 0 : index
    %23 = vector.load %arg3[%c0_10, %c0_11] : memref<64x32xf32, #tpu.memory_space<vmem>>, vector<16x32xf32>
    %24 = vector.shape_cast %22 : vector<8x8x16xf32> to vector<64x16xf32>
    %cst_12 = arith.constant dense<0.000000e+00> : vector<64x32xf32>
    %25 = tpu.matmul %24, %23, %cst_12 {dimension_numbers = #tpu.dot_dimension_numbers<[1], [0], [0], [1], [0, 0, 1, 1], [], []>} : vector<64x16xf32>, vector<16x32xf32>, vector<64x32xf32> -> vector<64x32xf32>
    %26 = arith.addf %5, %25 : vector<64x32xf32>
    %27 = vector.extract_strided_slice %4 {offsets = [0, 0, 16], sizes = [8, 8, 16], strides = [1, 1, 1]} : vector<8x8x192xf32> to vector<8x8x16xf32>
    %cst_13 = arith.constant 2.500000e-01 : f32
    %28 = vector.broadcast %cst_13 : f32 to vector<8x8x16xf32>
    %29 = arith.mulf %27, %28 : vector<8x8x16xf32>
    %30 = vector.extract_strided_slice %4 {offsets = [0, 0, 80], sizes = [8, 8, 16], strides = [1, 1, 1]} : vector<8x8x192xf32> to vector<8x8x16xf32>
    %31 = vector.extract_strided_slice %4 {offsets = [0, 0, 144], sizes = [8, 8, 16], strides = [1, 1, 1]} : vector<8x8x192xf32> to vector<8x8x16xf32>
    "tpu.trace_start"() <{level = 10 : i32, message = "bnd,bmd->bnm"}> : () -> ()
    %cst_14 = arith.constant dense<0.000000e+00> : vector<8x8x8xf32>
    %32 = tpu.matmul %29, %30, %cst_14 {dimension_numbers = #tpu.dot_dimension_numbers<[2], [2], [1], [1], [0, 0, 0, 1, 1, 1], [0], [0]>} : vector<8x8x16xf32>, vector<8x8x16xf32>, vector<8x8x8xf32> -> vector<8x8x8xf32>
    "tpu.trace_stop"() : () -> ()
    %cst_15 = arith.constant dense<0xFF800000> : vector<8x8xf32>
    %33 = vector.multi_reduction <maximumf>, %32, %cst_15 [2] : vector<8x8x8xf32> to vector<8x8xf32>
    %34 = vector.shape_cast %33 : vector<8x8xf32> to vector<8x8x1xf32>
    %35 = vector.broadcast %34 : vector<8x8x1xf32> to vector<8x8x8xf32>
    %36 = arith.subf %32, %35 : vector<8x8x8xf32>
    %37 = math.exp %36 : vector<8x8x8xf32>
    %cst_16 = arith.constant dense<0.000000e+00> : vector<8x8xf32>
    %38 = vector.multi_reduction <add>, %37, %cst_16 [2] : vector<8x8x8xf32> to vector<8x8xf32>
    %39 = vector.shape_cast %38 : vector<8x8xf32> to vector<8x8x1xf32>
    %40 = tpu.reciprocal %39 {approx = true} : vector<8x8x1xf32> -> vector<8x8x1xf32>
    %41 = vector.broadcast %40 : vector<8x8x1xf32> to vector<8x8x8xf32>
    %42 = arith.mulf %37, %41 : vector<8x8x8xf32>
    "tpu.trace_start"() <{level = 10 : i32, message = "bnm,bmd->bnd"}> : () -> ()
    %cst_17 = arith.constant dense<0.000000e+00> : vector<8x8x16xf32>
    %43 = tpu.matmul %42, %31, %cst_17 {dimension_numbers = #tpu.dot_dimension_numbers<[2], [1], [1], [2], [0, 0, 0, 1, 1, 2], [0], [0]>} : vector<8x8x8xf32>, vector<8x8x16xf32>, vector<8x8x16xf32> -> vector<8x8x16xf32>
    "tpu.trace_stop"() : () -> ()
    %c16 = arith.constant 16 : index
    %c0_18 = arith.constant 0 : index
    %44 = vector.load %arg3[%c16, %c0_18] : memref<64x32xf32, #tpu.memory_space<vmem>>, vector<16x32xf32>
    %45 = vector.shape_cast %43 : vector<8x8x16xf32> to vector<64x16xf32>
    %cst_19 = arith.constant dense<0.000000e+00> : vector<64x32xf32>
    %46 = tpu.matmul %45, %44, %cst_19 {dimension_numbers = #tpu.dot_dimension_numbers<[1], [0], [0], [1], [0, 0, 1, 1], [], []>} : vector<64x16xf32>, vector<16x32xf32>, vector<64x32xf32> -> vector<64x32xf32>
    %47 = arith.addf %26, %46 : vector<64x32xf32>
    %48 = vector.extract_strided_slice %4 {offsets = [0, 0, 32], sizes = [8, 8, 16], strides = [1, 1, 1]} : vector<8x8x192xf32> to vector<8x8x16xf32>
    %cst_20 = arith.constant 2.500000e-01 : f32
    %49 = vector.broadcast %cst_20 : f32 to vector<8x8x16xf32>
    %50 = arith.mulf %48, %49 : vector<8x8x16xf32>
    %51 = vector.extract_strided_slice %4 {offsets = [0, 0, 96], sizes = [8, 8, 16], strides = [1, 1, 1]} : vector<8x8x192xf32> to vector<8x8x16xf32>
    %52 = vector.extract_strided_slice %4 {offsets = [0, 0, 160], sizes = [8, 8, 16], strides = [1, 1, 1]} : vector<8x8x192xf32> to vector<8x8x16xf32>
    "tpu.trace_start"() <{level = 10 : i32, message = "bnd,bmd->bnm"}> : () -> ()
    %cst_21 = arith.constant dense<0.000000e+00> : vector<8x8x8xf32>
    %53 = tpu.matmul %50, %51, %cst_21 {dimension_numbers = #tpu.dot_dimension_numbers<[2], [2], [1], [1], [0, 0, 0, 1, 1, 1], [0], [0]>} : vector<8x8x16xf32>, vector<8x8x16xf32>, vector<8x8x8xf32> -> vector<8x8x8xf32>
    "tpu.trace_stop"() : () -> ()
    %cst_22 = arith.constant dense<0xFF800000> : vector<8x8xf32>
    %54 = vector.multi_reduction <maximumf>, %53, %cst_22 [2] : vector<8x8x8xf32> to vector<8x8xf32>
    %55 = vector.shape_cast %54 : vector<8x8xf32> to vector<8x8x1xf32>
    %56 = vector.broadcast %55 : vector<8x8x1xf32> to vector<8x8x8xf32>
    %57 = arith.subf %53, %56 : vector<8x8x8xf32>
    %58 = math.exp %57 : vector<8x8x8xf32>
    %cst_23 = arith.constant dense<0.000000e+00> : vector<8x8xf32>
    %59 = vector.multi_reduction <add>, %58, %cst_23 [2] : vector<8x8x8xf32> to vector<8x8xf32>
    %60 = vector.shape_cast %59 : vector<8x8xf32> to vector<8x8x1xf32>
    %61 = tpu.reciprocal %60 {approx = true} : vector<8x8x1xf32> -> vector<8x8x1xf32>
    %62 = vector.broadcast %61 : vector<8x8x1xf32> to vector<8x8x8xf32>
    %63 = arith.mulf %58, %62 : vector<8x8x8xf32>
    "tpu.trace_start"() <{level = 10 : i32, message = "bnm,bmd->bnd"}> : () -> ()
    %cst_24 = arith.constant dense<0.000000e+00> : vector<8x8x16xf32>
    %64 = tpu.matmul %63, %52, %cst_24 {dimension_numbers = #tpu.dot_dimension_numbers<[2], [1], [1], [2], [0, 0, 0, 1, 1, 2], [0], [0]>} : vector<8x8x8xf32>, vector<8x8x16xf32>, vector<8x8x16xf32> -> vector<8x8x16xf32>
    "tpu.trace_stop"() : () -> ()
    %c32 = arith.constant 32 : index
    %c0_25 = arith.constant 0 : index
    %65 = vector.load %arg3[%c32, %c0_25] : memref<64x32xf32, #tpu.memory_space<vmem>>, vector<16x32xf32>
    %66 = vector.shape_cast %64 : vector<8x8x16xf32> to vector<64x16xf32>
    %cst_26 = arith.constant dense<0.000000e+00> : vector<64x32xf32>
    %67 = tpu.matmul %66, %65, %cst_26 {dimension_numbers = #tpu.dot_dimension_numbers<[1], [0], [0], [1], [0, 0, 1, 1], [], []>} : vector<64x16xf32>, vector<16x32xf32>, vector<64x32xf32> -> vector<64x32xf32>
    %68 = arith.addf %47, %67 : vector<64x32xf32>
    %69 = vector.extract_strided_slice %4 {offsets = [0, 0, 48], sizes = [8, 8, 16], strides = [1, 1, 1]} : vector<8x8x192xf32> to vector<8x8x16xf32>
    %cst_27 = arith.constant 2.500000e-01 : f32
    %70 = vector.broadcast %cst_27 : f32 to vector<8x8x16xf32>
    %71 = arith.mulf %69, %70 : vector<8x8x16xf32>
    %72 = vector.extract_strided_slice %4 {offsets = [0, 0, 112], sizes = [8, 8, 16], strides = [1, 1, 1]} : vector<8x8x192xf32> to vector<8x8x16xf32>
    %73 = vector.extract_strided_slice %4 {offsets = [0, 0, 176], sizes = [8, 8, 16], strides = [1, 1, 1]} : vector<8x8x192xf32> to vector<8x8x16xf32>
    "tpu.trace_start"() <{level = 10 : i32, message = "bnd,bmd->bnm"}> : () -> ()
    %cst_28 = arith.constant dense<0.000000e+00> : vector<8x8x8xf32>
    %74 = tpu.matmul %71, %72, %cst_28 {dimension_numbers = #tpu.dot_dimension_numbers<[2], [2], [1], [1], [0, 0, 0, 1, 1, 1], [0], [0]>} : vector<8x8x16xf32>, vector<8x8x16xf32>, vector<8x8x8xf32> -> vector<8x8x8xf32>
    "tpu.trace_stop"() : () -> ()
    %cst_29 = arith.constant dense<0xFF800000> : vector<8x8xf32>
    %75 = vector.multi_reduction <maximumf>, %74, %cst_29 [2] : vector<8x8x8xf32> to vector<8x8xf32>
    %76 = vector.shape_cast %75 : vector<8x8xf32> to vector<8x8x1xf32>
    %77 = vector.broadcast %76 : vector<8x8x1xf32> to vector<8x8x8xf32>
    %78 = arith.subf %74, %77 : vector<8x8x8xf32>
    %79 = math.exp %78 : vector<8x8x8xf32>
    %cst_30 = arith.constant dense<0.000000e+00> : vector<8x8xf32>
    %80 = vector.multi_reduction <add>, %79, %cst_30 [2] : vector<8x8x8xf32> to vector<8x8xf32>
    %81 = vector.shape_cast %80 : vector<8x8xf32> to vector<8x8x1xf32>
    %82 = tpu.reciprocal %81 {approx = true} : vector<8x8x1xf32> -> vector<8x8x1xf32>
    %83 = vector.broadcast %82 : vector<8x8x1xf32> to vector<8x8x8xf32>
    %84 = arith.mulf %79, %83 : vector<8x8x8xf32>
    "tpu.trace_start"() <{level = 10 : i32, message = "bnm,bmd->bnd"}> : () -> ()
    %cst_31 = arith.constant dense<0.000000e+00> : vector<8x8x16xf32>
    %85 = tpu.matmul %84, %73, %cst_31 {dimension_numbers = #tpu.dot_dimension_numbers<[2], [1], [1], [2], [0, 0, 0, 1, 1, 2], [0], [0]>} : vector<8x8x8xf32>, vector<8x8x16xf32>, vector<8x8x16xf32> -> vector<8x8x16xf32>
    "tpu.trace_stop"() : () -> ()
    %c48 = arith.constant 48 : index
    %c0_32 = arith.constant 0 : index
    %86 = vector.load %arg3[%c48, %c0_32] : memref<64x32xf32, #tpu.memory_space<vmem>>, vector<16x32xf32>
    %87 = vector.shape_cast %85 : vector<8x8x16xf32> to vector<64x16xf32>
    %cst_33 = arith.constant dense<0.000000e+00> : vector<64x32xf32>
    %88 = tpu.matmul %87, %86, %cst_33 {dimension_numbers = #tpu.dot_dimension_numbers<[1], [0], [0], [1], [0, 0, 1, 1], [], []>} : vector<64x16xf32>, vector<16x32xf32>, vector<64x32xf32> -> vector<64x32xf32>
    %89 = arith.addf %68, %88 : vector<64x32xf32>
    %c0_34 = arith.constant 0 : index
    %c0_35 = arith.constant 0 : index
    %90 = vector.load %arg4[%c0_34, %c0_35] : memref<1x32xf32, #tpu.memory_space<vmem>>, vector<1x32xf32>
    %91 = vector.broadcast %90 : vector<1x32xf32> to vector<64x32xf32>
    %92 = arith.addf %89, %91 : vector<64x32xf32>
    %93 = vector.shape_cast %92 : vector<64x32xf32> to vector<8x8x32xf32>
    %c0_36 = arith.constant 0 : index
    %c0_37 = arith.constant 0 : index
    %c0_38 = arith.constant 0 : index
    %94 = vector.load %arg5[%c0_36, %c0_37, %c0_38] : memref<8x8x32xf32, #tpu.memory_space<vmem>>, vector<8x8x32xf32>
    tpu.vector_store %arg5[%c0_36, %c0_37, %c0_38], %93 {strides = array<i32>} : memref<8x8x32xf32, #tpu.memory_space<vmem>>, vector<8x8x32xf32>,
    return
  }
  func.func @transform_0(%arg0: i32) -> (i32, i32, i32) {
    %c0_i32 = arith.constant 0 : i32
    %c0_i32_0 = arith.constant 0 : i32
    %c0_i32_1 = arith.constant 0 : i32
    return %arg0, %c0_i32, %c0_i32_0 : i32, i32, i32
  }
  func.func @transform_1(%arg0: i32) -> (i32, i32) {
    %c0_i32 = arith.constant 0 : i32
    %c0_i32_0 = arith.constant 0 : i32
    %c0_i32_1 = arith.constant 0 : i32
    return %c0_i32, %c0_i32_0 : i32, i32
  }
  func.func @transform_2(%arg0: i32) -> (i32, i32) {
    %c0_i32 = arith.constant 0 : i32
    %c0_i32_0 = arith.constant 0 : i32
    %c0_i32_1 = arith.constant 0 : i32
    return %c0_i32, %c0_i32_0 : i32, i32
  }
  func.func @transform_3(%arg0: i32) -> (i32, i32) {
    %c0_i32 = arith.constant 0 : i32
    %c0_i32_0 = arith.constant 0 : i32
    %c0_i32_1 = arith.constant 0 : i32
    return %c0_i32, %c0_i32_0 : i32, i32
  }
  func.func @transform_4(%arg0: i32) -> (i32, i32, i32) {
    %c0_i32 = arith.constant 0 : i32
    %c0_i32_0 = arith.constant 0 : i32
    %c0_i32_1 = arith.constant 0 : i32
    return %arg0, %c0_i32, %c0_i32_0 : i32, i32, i32
  }
}

</mosaic_0001>

<bundles_post_ra>
// kernel: tpu_custom_call.1
= control target key start
LH: loop header
LB: loop body
LE: loop exit
PB: predicated region body
PF: predicated region fallthrough
CT: control target
= control target key end

     0   :  { %9 = vsyncpa [#allocation3], 0  ;;  %s7902_s0 = inlined_call_operand.vmem [shape: f32[8,8,32], index: 0, kind: input, shape index: {}]   ;;  %s7903_s1 = inlined_call_operand.hbm [shape: f32[32,192], index: 1, kind: input, shape index: {}]   ;;  %s7904_s2 = inlined_call_operand.vmem [shape: f32[64,32], index: 2, kind: input, shape index: {}]   ;;  %s7905_s3 = inlined_call_operand.vmem [shape: f32[1,32], index: 3, kind: input, shape index: {}]   ;;  %s7906_s4 = inlined_call_operand.hbm [shape: f32[8,8,32], index: 4, kind: output, shape index: {}]  }
   0x1   :  { %10 = vsyncpa [#allocation4], 0  ;;  %s6967_s15 = smov [#allocation2]   ;;  %s6919_s19 = scalar_lea.hbm %s7903_s1, 1024 }
   0x2   :  { %s18_s16 = sshll.u32 %s6967_s15, 4  ;;  %p6920_p0 = scmp.ne.s32.totalorder %s7903_s1, %s6919_s19  ;;  %s19_s16 = int_to_ptr.vmem [resolvable:$true] %s18_s16 }
   0x3   :  { %p6923_p1 = scmp.lt.u32.totalorder %s6919_s19, %s7903_s1 }
   0x5   :  { %p6925_p2 = pnand %p6923_p1, %p6920_p0 }
   0x7   :  { %6928 = shalt.err (!%p6925_p2)
}
   0x8   :  { %s6929_s24 = scalar_lea.vmem %s19_s16, 1024  ;;  %p6934_p4 = scmp.lt.s32.totalorder %s19_s16, %s19_s16 }
   0x9   :  { %p6930_p3 = scmp.ne.s32.totalorder %s19_s16, %s6929_s24  ;;  %p6935_p5 = scmp.lt.s32.totalorder %s6929_s24, %s6929_s24 }
   0xb   :  { %p6936_p6 = por %p6935_p5, %p6934_p4 }
   0xd   :  { %p6937_p7 = pnand %p6936_p6, %p6930_p3 }
   0xf   :  { %6940 = shalt.err (!%p6937_p7)
}
  0x10   :  { %s6968_s25 = smov 256   ;;  %s6969_s26 = smov 16  }
  0x11   :  { %24 = dma.hbm_to_vmem [thread:$0]  %s7903_s1, 1024, %s19_s16, [#allocation3], %s6968_s25, %s6968_s25, %s6969_s26  }
  0x12   :  { %6963 = dma.done.wait [#allocation3], 1024  }
  0x13   :  { %6964 = vsyncadd [#allocation3], 4294966272  ;;  %v6970_v0 = vmov 0.0   ;;  %v41_v1 = vld [vmem:[#allocation2 + $0x8] sm:$0xff]  ;;  %v43_v2 = vld [vmem:[#allocation2 + $0x18] sm:$0xff]  ;;  %vm48_vm0 = vcmask 261120  }
  0x14   :  { %137 = vmatprep.mubr.f32.mxu0 %v6970_v0  ;;  %6350 = vmatprep.subr.mxu1 %v6970_v0  ;;  %v40_v3 = vld [vmem:[#allocation2] sm:$0xff]  ;;  %v6729_v4 = vpack.c.bf16 %v43_v2, %v41_v1  ;;  %v42_v5 = vld [vmem:[#allocation2 + $0x10] sm:$0xff]  ;;  %v45_v6 = vld [vmem:[#allocation2 + $0x28] sm:$0xff]  ;;  %vm6971_vm1 = vmmov 0   ;;  %s6972_s18 = smov 64   ;;  %vm197_vm2 = vcmask 130048  }
  0x15   :  { %v47_v7 = vld [vmem:[#allocation2 + $0x38] sm:$0xff]  ;;  %v6731_v8 = vpack.c.bf16 %v42_v5, %v40_v3  ;;  %v44_v10 = vld [vmem:[#allocation2 + $0x20] sm:$0xff]  ;;  %v46_v11 = vld [vmem:[#allocation2 + $0x30] sm:$0xff]  ;;  %6352 = vmatprep.mubr.msk.f32.mxu1 %vm6971_vm1, %v6970_v0  ;;  %vm819_vm3 = vcmask 64512   ;;  %s6974_s19 = smov 112   ;;  %s6975_s20 = smov 32  }
  0x16   :  { %v6733_v9 = vpack.c.bf16 %v47_v7, %v45_v6  ;;  %6730 = vmatprep.subr.bf16.mxu0 %v6729_v4  ;;  %v6735_v12 = vpack.c.bf16 %v46_v11, %v44_v10  ;;  %v32_v13 = vld [vmem:[%s7902_s0] sm:$0xff]  ;;  %v33_v14 = vld [vmem:[%s7902_s0 + $0x8] sm:$0xff]  ;;  %v34_v15 = vld [vmem:[%s7902_s0 + $0x10] sm:$0xff]  ;;  %s6976_s21 = smov 96   ;;  %s6977_s30 = smov 80  }
  0x17   :  { %6732 = vmatpush1.bf16.msra.mxu0 %v6731_v8  ;;  %v35_v16 = vld [vmem:[%s7902_s0 + $0x18] sm:$0xff]  ;;  %v36_v17 = vld [vmem:[%s7902_s0 + $0x20] sm:$0xff]  ;;  %v37_v18 = vld [vmem:[%s7902_s0 + $0x28] sm:$0xff] }
  0x18   :  { %6734 = vmatprep.subr.bf16.mxu0 %v6733_v9  ;;  %v38_v19 = vld [vmem:[%s7902_s0 + $0x30] sm:$0xff]  ;;  %v39_v20 = vld [vmem:[%s7902_s0 + $0x38] sm:$0xff]  ;;  %s6973_s0 = smov 48  }
  0x1b   :  { %6736 = vmatpush1.bf16.msra.mxu0 %v6735_v12 }
  0x1c   :  { %6345 = vmatprep.subr.mxu0 %v6970_v0 }
  0x1e   :  { %6040 = vmatmul.mubr.msk.f32.vlgmr.msra.gmra.mrb[0].mxu0 %vm48_vm0, %v32_v13 }
  0x1f   :  { %143 = vmatprep.mubr.f32.mxu0 %v6970_v0 }
  0x22   :  { %6041 = vmatmul.mubr.msk.f32.gmra.mrb[2].mxu0 %vm48_vm0, %v33_v14 }
  0x23   :  { %149 = vmatprep.mubr.f32.mxu0 %v6970_v0 }
  0x26   :  { %6042 = vmatmul.mubr.msk.f32.gmra.mrb[4].mxu0 %vm48_vm0, %v34_v15 }
  0x27   :  { %155 = vmatprep.mubr.f32.mxu0 %v6970_v0 }
  0x2a   :  { %6043 = vmatmul.mubr.msk.f32.gmra.mrb[6].mxu0 %vm48_vm0, %v35_v16 }
  0x2b   :  { %161 = vmatprep.mubr.f32.mxu0 %v6970_v0 }
  0x2e   :  { %6044 = vmatmul.mubr.msk.f32.gmra.mrb[8].mxu0 %vm48_vm0, %v36_v17 }
  0x2f   :  { %167 = vmatprep.mubr.f32.mxu0 %v6970_v0 }
  0x32   :  { %6045 = vmatmul.mubr.msk.f32.gmra.mrb[10].mxu0 %vm48_vm0, %v37_v18 }
  0x33   :  { %173 = vmatprep.mubr.f32.mxu0 %v6970_v0 }
  0x36   :  { %6046 = vmatmul.mubr.msk.f32.gmra.mrb[12].mxu0 %vm48_vm0, %v38_v19 }
  0x37   :  { %179 = vmatprep.mubr.f32.mxu0 %v6970_v0 }
  0x3a   :  { %6047 = vmatmul.mubr.msk.f32.gmra.mrb[14].mxu0 %vm48_vm0, %v39_v20 }
  0x3b   :  { %6347 = vmatprep.mubr.msk.f32.mxu0 %vm6971_vm1, %v6970_v0 }
  0xf1   :  { %v7065_v21 = vpop.f32.mrb[0].mxu0 }
  0xf2   :  { %v7067_v22 = vpop.f32.mrb[1].mxu0  ;;  %v7160_v51 = vmul.f32 0.25, %v7065_v21 }
  0xf5   :  { %v7069_v23 = vpop.f32.mrb[2].mxu0 }
  0xf6   :  { %274 = vrot.lane.b32.xlu0 %v7069_v23, %s6972_s18  ;;  %v7072_v24 = vpop.f32.mrb[3].mxu0  ;;  %v7107_v38 = vmul.f32 0.25, %v7069_v23 }
  0xf9   :  { %v7074_v25 = vpop.f32.mrb[4].mxu0 }
  0xfa   :  { %352 = vrot.lane.b32.xlu0 %v7074_v25, %s6972_s18  ;;  %v7077_v26 = vpop.f32.mrb[5].mxu0  ;;  %v7116_v40 = vmul.f32 0.25, %v7074_v25 }
  0xfd   :  { %v7079_v27 = vpop.f32.mrb[6].mxu0 }
  0xfe   :  { %430 = vrot.lane.b32.xlu1 %v7079_v27, %s6972_s18  ;;  %v7082_v28 = vpop.f32.mrb[7].mxu0  ;;  %v7125_v42 = vmul.f32 0.25, %v7079_v27 }
 0x101   :  { %v7084_v29 = vpop.f32.mrb[8].mxu0 }
 0x102   :  { %508 = vrot.lane.b32.xlu1 %v7084_v29, %s6972_s18  ;;  %v7087_v30 = vpop.f32.mrb[9].mxu0  ;;  %v7134_v44 = vmul.f32 0.25, %v7084_v29 }
 0x105   :  { %v7089_v31 = vpop.f32.mrb[10].mxu0 }
 0x106   :  { %586 = vrot.lane.b32.xlu0 %v7089_v31, %s6972_s18  ;;  %v7092_v32 = vpop.f32.mrb[11].mxu0  ;;  %v7143_v46 = vmul.f32 0.25, %v7089_v31 }
 0x109   :  { %v7094_v33 = vpop.f32.mrb[12].mxu0 }
 0x10a   :  { %664 = vrot.lane.b32.xlu1 %v7094_v33, %s6972_s18  ;;  %v7097_v34 = vpop.f32.mrb[13].mxu0  ;;  %v7152_v48 = vmul.f32 0.25, %v7094_v33 }
 0x10d   :  { %v7099_v35 = vpop.f32.mrb[14].mxu0 }
 0x10e   :  { %195 = vrot.lane.b32.xlu1 %v7065_v21, %s6972_s18  ;;  %742 = vrot.lane.b32.xlu0 %v7099_v35, %s6972_s18  ;;  %v7103_v36 = vpop.f32.mrb[15].mxu0  ;;  %v7163_v52 = vmul.f32 0.25, %v7099_v35 }
 0x168   :  { %v275_v37 = vpop.permute.xlu0 %274 }
 0x169   :  { %6351 = vmatpush3.xpose.msk.msra.mxu1 %vm197_vm2, %v275_v37 }
 0x16a   :  { %6355 = vmatprep.subr.mxu1 %v6970_v0 }
 0x16c   :  { %6353 = vmatmul.mubr.msk.f32.vlgmr.msra.gmra.mrb[0].mxu1 %vm197_vm2, %v7107_v38  ;;  %v353_v39 = vpop.permute.xlu0 %352 }
 0x16d   :  { %6356 = vmatpush3.xpose.msk.msra.mxu1 %vm197_vm2, %v353_v39  ;;  %6357 = vmatprep.mubr.msk.f32.mxu1 %vm6971_vm1, %v6970_v0 }
 0x16e   :  { %6360 = vmatprep.subr.mxu1 %v6970_v0 }
 0x170   :  { %6358 = vmatmul.mubr.msk.f32.vlgmr.msra.gmra.mrb[2].mxu1 %vm197_vm2, %v7116_v40  ;;  %v431_v41 = vpop.permute.xlu1 %430 }
 0x171   :  { %6361 = vmatpush3.xpose.msk.msra.mxu1 %vm197_vm2, %v431_v41  ;;  %6362 = vmatprep.mubr.msk.f32.mxu1 %vm6971_vm1, %v6970_v0 }
 0x172   :  { %6365 = vmatprep.subr.mxu1 %v6970_v0 }
 0x174   :  { %6363 = vmatmul.mubr.msk.f32.vlgmr.msra.gmra.mrb[4].mxu1 %vm197_vm2, %v7125_v42  ;;  %v509_v43 = vpop.permute.xlu1 %508 }
 0x175   :  { %6366 = vmatpush3.xpose.msk.msra.mxu1 %vm197_vm2, %v509_v43  ;;  %6367 = vmatprep.mubr.msk.f32.mxu1 %vm6971_vm1, %v6970_v0 }
 0x176   :  { %6370 = vmatprep.subr.mxu1 %v6970_v0 }
 0x178   :  { %6368 = vmatmul.mubr.msk.f32.vlgmr.msra.gmra.mrb[6].mxu1 %vm197_vm2, %v7134_v44  ;;  %v587_v45 = vpop.permute.xlu0 %586 }
 0x179   :  { %6371 = vmatpush3.xpose.msk.msra.mxu1 %vm197_vm2, %v587_v45  ;;  %6372 = vmatprep.mubr.msk.f32.mxu1 %vm6971_vm1, %v6970_v0 }
 0x17a   :  { %6375 = vmatprep.subr.mxu1 %v6970_v0 }
 0x17c   :  { %6373 = vmatmul.mubr.msk.f32.vlgmr.msra.gmra.mrb[8].mxu1 %vm197_vm2, %v7143_v46  ;;  %v665_v47 = vpop.permute.xlu1 %664 }
 0x17d   :  { %6376 = vmatpush3.xpose.msk.msra.mxu1 %vm197_vm2, %v665_v47  ;;  %6377 = vmatprep.mubr.msk.f32.mxu1 %vm6971_vm1, %v6970_v0 }
 0x17e   :  { %6380 = vmatprep.subr.mxu1 %v6970_v0 }
 0x180   :  { %v196_v49 = vpop.permute.xlu1 %195  ;;  %6378 = vmatmul.mubr.msk.f32.vlgmr.msra.gmra.mrb[10].mxu1 %vm197_vm2, %v7152_v48  ;;  %v743_v50 = vpop.permute.xlu0 %742 }
 0x181   :  { %6346 = vmatpush3.xpose.msk.msra.mxu0 %vm197_vm2, %v196_v49  ;;  %6381 = vmatpush3.xpose.msk.msra.mxu1 %vm197_vm2, %v743_v50 }
 0x182   :  { %6382 = vmatprep.mubr.msk.f32.mxu1 %vm6971_vm1, %v6970_v0  ;;  %6385 = vmatprep.subr.mxu1 %v6970_v0 }
 0x183   :  { %6390 = vmatprep.subr.mxu0 %v6970_v0 }
 0x184   :  { %6348 = vmatmul.mubr.msk.f32.vlgmr.msra.gmra.mrb[16].mxu0 %vm197_vm2, %v7160_v51  ;;  %6383 = vmatmul.mubr.msk.f32.vlgmr.msra.gmra.mrb[12].mxu1 %vm197_vm2, %v7163_v52 }
 0x185   :  { %6386 = vmatpush3.msra.mxu1 %v7067_v22  ;;  %6391 = vmatpush3.msra.mxu0 %v7072_v24 }
 0x186   :  { %6392 = vmatprep.mubr.msk.f32.mxu0 %vm6971_vm1, %v6970_v0  ;;  %6400 = vmatprep.subr.mxu0 %v6970_v0 }
 0x187   :  { %6387 = vmatprep.mubr.msk.f32.mxu1 %vm6971_vm1, %v6970_v0  ;;  %6395 = vmatprep.subr.mxu1 %v6970_v0 }
 0x23f   :  { %v347_v53 = vpop.f32.mrb[0].mxu1 }
 0x240   :  { %v6354_v54 = vpop.f32.mrb[1].mxu1  ;;  %v823_v55 = vsel %vm819_vm3, %v347_v53, -inf }
 0x241   :  { %824 = vmax.xlane.f32.xlu0 %v823_v55 }
 0x243   :  { %v7182_v56 = vpop.f32.mrb[2].mxu1 }
 0x244   :  { %v6359_v57 = vpop.f32.mrb[3].mxu1  ;;  %v826_v54 = vsel %vm819_vm3, %v7182_v56, -inf }
 0x247   :  { %v503_v58 = vpop.f32.mrb[4].mxu1 }
 0x248   :  { %v6364_v59 = vpop.f32.mrb[5].mxu1  ;;  %v829_v60 = vsel %vm819_vm3, %v503_v58, -inf }
 0x249   :  { %830 = vmax.xlane.f32.xlu1 %v829_v60 }
 0x24b   :  { %v7185_v61 = vpop.f32.mrb[6].mxu1 }
 0x24c   :  { %v6369_v62 = vpop.f32.mrb[7].mxu1  ;;  %v832_v57 = vsel %vm819_vm3, %v7185_v61, -inf }
 0x24f   :  { %v659_v63 = vpop.f32.mrb[8].mxu1 }
 0x250   :  { %v6374_v1 = vpop.f32.mrb[9].mxu1  ;;  %v835_v2 = vsel %vm819_vm3, %v659_v63, -inf }
 0x251   :  { %836 = vmax.xlane.f32.xlu0 %v835_v2 }
 0x253   :  { %v7188_v3 = vpop.f32.mrb[10].mxu1 }
 0x254   :  { %v6379_v4 = vpop.f32.mrb[11].mxu1 }
 0x257   :  { %v7190_v5 = vpop.f32.mrb[16].mxu0  ;;  %v815_v6 = vpop.f32.mrb[12].mxu1 }
 0x258   :  { %v6349_v7 = vpop.f32.mrb[17].mxu0  ;;  %v6384_v8 = vpop.f32.mrb[13].mxu1  ;;  %v841_v9 = vsel %vm819_vm3, %v815_v6, -inf  ;;  %v820_v55 = vsel %vm819_vm3, %v7190_v5, -inf }
 0x259   :  { %842 = vmax.xlane.f32.xlu0 %v841_v9 }
 0x2ce   :  { %v825_v10 = vpop.xlane.xlu0 %824 }
 0x2cf   :  { %v845_v11 = vsub.f32 %v347_v53, %v825_v10 }
 0x2d1   :  { %v854_v12 = vmul.f32 1.442695, %v845_v11 }
 0x2d3   :  { %6791 = vpow2.f32 %v854_v12 }
 0x2d6   :  { %v831_v13 = vpop.xlane.xlu1 %830 }
 0x2d7   :  { %v847_v14 = vsub.f32 %v503_v58, %v831_v13  ;;  %v838_v58 = vsel %vm819_vm3, %v7188_v3, -inf }
 0x2d9   :  { %v858_v15 = vmul.f32 1.442695, %v847_v14 }
 0x2db   :  { %6793 = vpow2.f32 %v858_v15 }
 0x2dd   :  { %v6792_v16 = vpop.eup %6791 }
 0x2de   :  { %v837_v17 = vpop.xlane.xlu0 %836  ;;  %v871_v18 = vsel %vm819_vm3, %v6792_v16, 0.0 }
 0x2df   :  { %v849_v19 = vsub.f32 %v659_v63, %v837_v17  ;;  %872 = vadd.xlane.f32.xlu1 %v871_v18 }
 0x2e1   :  { %v862_v20 = vmul.f32 1.442695, %v849_v19 }
 0x2e3   :  { %6795 = vpow2.f32 %v862_v20 }
 0x2e5   :  { %v6794_v37 = vpop.eup %6793 }
 0x2e6   :  { %v843_v39 = vpop.xlane.xlu0 %842  ;;  %v877_v41 = vsel %vm819_vm3, %v6794_v37, 0.0 }
 0x2e7   :  { %v851_v43 = vsub.f32 %v815_v6, %v843_v39  ;;  %878 = vadd.xlane.f32.xlu0 %v877_v41 }
 0x2e9   :  { %v866_v45 = vmul.f32 1.442695, %v851_v43 }
 0x2eb   :  { %6797 = vpow2.f32 %v866_v45 }
 0x2ed   :  { %v6796_v47 = vpop.eup %6795 }
 0x2ee   :  { %v883_v49 = vsel %vm819_vm3, %v6796_v47, 0.0 }
 0x2ef   :  { %884 = vadd.xlane.f32.xlu1 %v883_v49 }
 0x2f5   :  { %v6798_v50 = vpop.eup %6797 }
 0x2f6   :  { %v889_v53 = vsel %vm819_vm3, %v6798_v50, 0.0 }
 0x2f7   :  { %890 = vadd.xlane.f32.xlu0 %v889_v53 }
 0x300   :  { %1574 = vrot.lane.b32.xlu1 %v7069_v23, %s6973_s0 }
 0x304   :  { %1730 = vrot.lane.b32.xlu1 %v7079_v27, %s6973_s0 }
 0x308   :  { %1728 = vrot.lane.b32.xlu1 %v7125_v42, %s6974_s19 }
 0x30c   :  { %1884 = vrot.lane.b32.xlu1 %v7143_v46, %s6974_s19 }
 0x30d   :  { %1572 = vrot.lane.b32.xlu0 %v7107_v38, %s6974_s19 }
 0x310   :  { %2040 = vrot.lane.b32.xlu1 %v7163_v52, %s6974_s19 }
 0x311   :  { %1886 = vrot.lane.b32.xlu0 %v7089_v31, %s6973_s0 }
 0x315   :  { %2042 = vrot.lane.b32.xlu0 %v7099_v35, %s6973_s0 }
 0x334   :  { %827 = vmax.xlane.f32.xlu1 %v826_v54  ;;  %821 = vmax.xlane.f32.xlu0 %v820_v55 }
 0x338   :  { %833 = vmax.xlane.f32.xlu0 %v832_v57 }
 0x33c   :  { %839 = vmax.xlane.f32.xlu0 %v838_v58 }
 0x36c   :  { %v873_v59 = vpop.xlane.xlu1 %872 }
 0x36d   :  { %6799 = vrcp.f32 %v873_v59 }
 0x374   :  { %v879_v60 = vpop.xlane.xlu0 %878 }
 0x375   :  { %6801 = vrcp.f32 %v879_v60 }
 0x377   :  { %v6800_v62 = vpop.eup %6799 }
 0x378   :  { %v901_v63 = vmul.f32 %v6800_v62, %v6792_v16 }
 0x37a   :  { %6393 = vmatmul.mubr.msk.f32.vlgmr.msra.gmra.mrb[18].mxu0 %vm819_vm3, %v901_v63 }
 0x37b   :  { %6401 = vmatpush3.msra.mxu0 %v7082_v28  ;;  %6402 = vmatprep.mubr.msk.f32.mxu0 %vm6971_vm1, %v6970_v0 }
 0x37c   :  { %v885_v1 = vpop.xlane.xlu1 %884  ;;  %6410 = vmatprep.subr.mxu0 %v6970_v0 }
 0x37d   :  { %6803 = vrcp.f32 %v885_v1 }
 0x37f   :  { %v6802_v2 = vpop.eup %6801 }
 0x380   :  { %v903_v4 = vmul.f32 %v6802_v2, %v6794_v37  ;;  %v1575_v9 = vpop.permute.xlu1 %1574 }
 0x382   :  { %6403 = vmatmul.mubr.msk.f32.vlgmr.msra.gmra.mrb[20].mxu0 %vm819_vm3, %v903_v4 }
 0x383   :  { %6411 = vmatpush3.msra.mxu0 %v7092_v32  ;;  %6412 = vmatprep.mubr.msk.f32.mxu0 %vm6971_vm1, %v6970_v0 }
 0x384   :  { %v891_v6 = vpop.xlane.xlu0 %890  ;;  %6420 = vmatprep.subr.mxu0 %v6970_v0  ;;  %v1731_v11 = vpop.permute.xlu1 %1730 }
 0x385   :  { %6805 = vrcp.f32 %v891_v6 }
 0x387   :  { %v6804_v7 = vpop.eup %6803 }
 0x388   :  { %v905_v8 = vmul.f32 %v6804_v7, %v6796_v47  ;;  %v1573_v13 = vpop.permute.xlu0 %1572  ;;  %v1729_v14 = vpop.permute.xlu1 %1728 }
 0x38a   :  { %6413 = vmatmul.mubr.msk.f32.vlgmr.msra.gmra.mrb[22].mxu0 %vm819_vm3, %v905_v8 }
 0x38b   :  { %6421 = vmatpush3.msra.mxu0 %v7103_v36  ;;  %6422 = vmatprep.mubr.msk.f32.mxu0 %vm6971_vm1, %v6970_v0 }
 0x38c   :  { %6430 = vmatprep.subr.mxu0 %v6970_v0  ;;  %v1887_v15 = vpop.permute.xlu0 %1886  ;;  %v1885_v16 = vpop.permute.xlu1 %1884 }
 0x38f   :  { %v6806_v10 = vpop.eup %6805 }
 0x390   :  { %v907_v12 = vmul.f32 %v6806_v10, %v6798_v50  ;;  %v2043_v17 = vpop.permute.xlu0 %2042  ;;  %v2041_v18 = vpop.permute.xlu1 %2040 }
 0x392   :  { %6423 = vmatmul.mubr.msk.f32.vlgmr.msra.gmra.mrb[24].mxu0 %vm819_vm3, %v907_v12 }
 0x393   :  { %6431 = vmatpush3.xpose.msk.msra.mxu0 %vm197_vm2, %v1575_v9  ;;  %6432 = vmatprep.mubr.msk.f32.mxu0 %vm6971_vm1, %v6970_v0 }
 0x394   :  { %6440 = vmatprep.subr.mxu0 %v6970_v0 }
 0x396   :  { %6433 = vmatmul.mubr.msk.f32.vlgmr.msra.gmra.mrb[26].mxu0 %vm197_vm2, %v1573_v13 }
 0x397   :  { %6441 = vmatpush3.xpose.msk.msra.mxu0 %vm197_vm2, %v1731_v11  ;;  %6442 = vmatprep.mubr.msk.f32.mxu0 %vm6971_vm1, %v6970_v0 }
 0x398   :  { %6450 = vmatprep.subr.mxu0 %v6970_v0 }
 0x39a   :  { %6443 = vmatmul.mubr.msk.f32.vlgmr.msra.gmra.mrb[28].mxu0 %vm197_vm2, %v1729_v14 }
 0x39b   :  { %6451 = vmatpush3.xpose.msk.msra.mxu0 %vm197_vm2, %v1887_v15  ;;  %6452 = vmatprep.mubr.msk.f32.mxu0 %vm6971_vm1, %v6970_v0 }
 0x39c   :  { %6460 = vmatprep.subr.mxu0 %v6970_v0 }
 0x39e   :  { %6453 = vmatmul.mubr.msk.f32.vlgmr.msra.gmra.mrb[30].mxu0 %vm197_vm2, %v1885_v16 }
 0x39f   :  { %6461 = vmatpush3.xpose.msk.msra.mxu0 %vm197_vm2, %v2043_v17  ;;  %6462 = vmatprep.mubr.msk.f32.mxu0 %vm6971_vm1, %v6970_v0 }
 0x3a0   :  { %6470 = vmatprep.subr.mxu0 %v6970_v0 }
 0x3a2   :  { %6463 = vmatmul.mubr.msk.f32.vlgmr.msra.gmra.mrb[32].mxu0 %vm197_vm2, %v2041_v18 }
 0x3a3   :  { %6472 = vmatprep.mubr.msk.f32.mxu0 %vm6971_vm1, %v6970_v0 }
 0x3c1   :  { %v828_v19 = vpop.xlane.xlu1 %827  ;;  %v822_v20 = vpop.xlane.xlu0 %821 }
 0x3c2   :  { %v846_v37 = vsub.f32 %v7182_v56, %v828_v19  ;;  %v844_v39 = vsub.f32 %v7190_v5, %v822_v20 }
 0x3c4   :  { %v856_v41 = vmul.f32 1.442695, %v846_v37  ;;  %v852_v43 = vmul.f32 1.442695, %v844_v39 }
 0x3c5   :  { %v834_v45 = vpop.xlane.xlu0 %833 }
 0x3c6   :  { %6807 = vpow2.f32 %v856_v41  ;;  %v848_v47 = vsub.f32 %v7185_v61, %v834_v45 }
 0x3c7   :  { %6809 = vpow2.f32 %v852_v43 }
 0x3c8   :  { %v860_v49 = vmul.f32 1.442695, %v848_v47 }
 0x3c9   :  { %v840_v50 = vpop.xlane.xlu0 %839 }
 0x3ca   :  { %6811 = vpow2.f32 %v860_v49  ;;  %v850_v53 = vsub.f32 %v7188_v3, %v840_v50 }
 0x3cc   :  { %v864_v54 = vmul.f32 1.442695, %v850_v53 }
 0x3ce   :  { %6813 = vpow2.f32 %v864_v54 }
 0x3d0   :  { %v6808_v55 = vpop.eup %6807 }
 0x3d1   :  { %v6810_v57 = vpop.eup %6809  ;;  %v874_v56 = vsel %vm819_vm3, %v6808_v55, 0.0 }
 0x3d2   :  { %875 = vadd.xlane.f32.xlu0 %v874_v56  ;;  %v868_v5 = vsel %vm819_vm3, %v6810_v57, 0.0 }
 0x3d3   :  { %869 = vadd.xlane.f32.xlu1 %v868_v5 }
 0x3d4   :  { %v6812_v58 = vpop.eup %6811 }
 0x3d5   :  { %v880_v59 = vsel %vm819_vm3, %v6812_v58, 0.0 }
 0x3d7   :  { %881 = vadd.xlane.f32.xlu1 %v880_v59 }
 0x3d8   :  { %v6814_v61 = vpop.eup %6813 }
 0x3d9   :  { %v886_v60 = vsel %vm819_vm3, %v6814_v61, 0.0 }
 0x3da   :  { %887 = vadd.xlane.f32.xlu0 %v886_v60 }
 0x3e8   :  { %1496 = vrot.lane.b32.xlu1 %v7065_v21, %s6973_s0 }
 0x3ec   :  { %1652 = vrot.lane.b32.xlu1 %v7074_v25, %s6973_s0 }
 0x3f0   :  { %1650 = vrot.lane.b32.xlu1 %v7116_v40, %s6974_s19  ;;  %1494 = vrot.lane.b32.xlu0 %v7160_v51, %s6974_s19 }
 0x3f4   :  { %1806 = vrot.lane.b32.xlu1 %v7134_v44, %s6974_s19  ;;  %1808 = vrot.lane.b32.xlu0 %v7084_v29, %s6973_s0 }
 0x3f8   :  { %1962 = vrot.lane.b32.xlu1 %v7152_v48, %s6974_s19  ;;  %1964 = vrot.lane.b32.xlu0 %v7094_v33, %s6973_s0 }
 0x44d   :  { %v7283_v3 = vpop.f32.mrb[18].mxu0 }
 0x44e   :  { %v6394_v62 = vpop.f32.mrb[19].mxu0 }
 0x455   :  { %v7285_v63 = vpop.f32.mrb[20].mxu0 }
 0x456   :  { %v6404_v1 = vpop.f32.mrb[21].mxu0 }
 0x45d   :  { %v7287_v2 = vpop.f32.mrb[22].mxu0 }
 0x45e   :  { %v6414_v4 = vpop.f32.mrb[23].mxu0 }
 0x45f   :  { %v876_v7 = vpop.xlane.xlu0 %875 }
 0x460   :  { %v870_v6 = vpop.xlane.xlu1 %869 }
 0x461   :  { %6815 = vrcp.f32 %v870_v6 }
 0x462   :  { %6817 = vrcp.f32 %v876_v7 }
 0x464   :  { %v882_v8 = vpop.xlane.xlu1 %881 }
 0x465   :  { %v7289_v9 = vpop.f32.mrb[24].mxu0  ;;  %6819 = vrcp.f32 %v882_v8 }
 0x466   :  { %v6424_v10 = vpop.f32.mrb[25].mxu0 }
 0x467   :  { %v888_v11 = vpop.xlane.xlu0 %887 }
 0x468   :  { %6821 = vrcp.f32 %v888_v11  ;;  %v1497_v47 = vpop.permute.xlu1 %1496 }
 0x469   :  { %v7291_v12 = vpop.f32.mrb[26].mxu0 }
 0x46a   :  { %v6434_v13 = vpop.f32.mrb[27].mxu0  ;;  %v2121_v14 = vsel %vm819_vm3, %v7291_v12, -inf }
 0x46b   :  { %v6816_v15 = vpop.eup %6815  ;;  %2122 = vmax.xlane.f32.xlu0 %v2121_v14  ;;  %v1495_v5 = vpop.permute.xlu0 %1494 }
 0x46c   :  { %v900_v16 = vmul.f32 %v6816_v15, %v6810_v57  ;;  %v6818_v17 = vpop.eup %6817  ;;  %v1653_v56 = vpop.permute.xlu1 %1652 }
 0x46d   :  { %v7295_v18 = vpop.f32.mrb[28].mxu0  ;;  %v902_v37 = vmul.f32 %v6818_v17, %v6808_v55 }
 0x46e   :  { %6388 = vmatmul.mubr.msk.f32.vlgmr.msra.gmra.mrb[14].mxu1 %vm819_vm3, %v900_v16  ;;  %v6444_v19 = vpop.f32.mrb[29].mxu0  ;;  %v2127_v20 = vsel %vm819_vm3, %v7295_v18, -inf }
 0x46f   :  { %6396 = vmatpush3.msra.mxu1 %v7077_v26  ;;  %2128 = vmax.xlane.f32.xlu1 %v2127_v20  ;;  %v6820_v39 = vpop.eup %6819  ;;  %v1809_v59 = vpop.permute.xlu0 %1808 }
 0x470   :  { %6397 = vmatprep.mubr.msk.f32.mxu1 %vm6971_vm1, %v6970_v0  ;;  %6405 = vmatprep.subr.mxu1 %v6970_v0  ;;  %v904_v49 = vmul.f32 %v6820_v39, %v6812_v58  ;;  %v1651_v58 = vpop.permute.xlu1 %1650 }
 0x471   :  { %v1958_v41 = vpop.f32.mrb[30].mxu0 }
 0x472   :  { %6398 = vmatmul.mubr.msk.f32.vlgmr.msra.gmra.mrb[16].mxu1 %vm819_vm3, %v902_v37  ;;  %v6454_v43 = vpop.f32.mrb[31].mxu0  ;;  %v2133_v45 = vsel %vm819_vm3, %v1958_v41, -inf  ;;  %v6822_v50 = vpop.eup %6821 }
 0x473   :  { %6406 = vmatpush3.msra.mxu1 %v7087_v30  ;;  %2134 = vmax.xlane.f32.xlu0 %v2133_v45  ;;  %v906_v57 = vmul.f32 %v6822_v50, %v6814_v61  ;;  %v1965_v60 = vpop.permute.xlu0 %1964 }
 0x474   :  { %6407 = vmatprep.mubr.msk.f32.mxu1 %vm6971_vm1, %v6970_v0  ;;  %6415 = vmatprep.subr.mxu1 %v6970_v0  ;;  %v1807_v61 = vpop.permute.xlu1 %1806 }
 0x475   :  { %v7310_v53 = vpop.f32.mrb[32].mxu0 }
 0x476   :  { %6408 = vmatmul.mubr.msk.f32.vlgmr.msra.gmra.mrb[18].mxu1 %vm819_vm3, %v904_v49  ;;  %v6464_v54 = vpop.f32.mrb[33].mxu0  ;;  %v2139_v55 = vsel %vm819_vm3, %v7310_v53, -inf }
 0x477   :  { %6416 = vmatpush3.msra.mxu1 %v7097_v34  ;;  %2140 = vmax.xlane.f32.xlu0 %v2139_v55 }
 0x478   :  { %6417 = vmatprep.mubr.msk.f32.mxu1 %vm6971_vm1, %v6970_v0  ;;  %6425 = vmatprep.subr.mxu1 %v6970_v0  ;;  %v1963_v62 = vpop.permute.xlu1 %1962 }
 0x47a   :  { %6418 = vmatmul.mubr.msk.f32.vlgmr.msra.gmra.mrb[20].mxu1 %vm819_vm3, %v906_v57 }
 0x47b   :  { %6427 = vmatprep.mubr.msk.f32.mxu1 %vm6971_vm1, %v6970_v0 }
 0x47e   :  { %6426 = vmatpush3.xpose.msk.msra.mxu1 %vm197_vm2, %v1497_v47 }
 0x47f   :  { %6435 = vmatprep.subr.mxu1 %v6970_v0 }
 0x480   :  { %2284 = vrot.lane.b32.xlu1 %v7072_v24, %s6974_s19 }
 0x481   :  { %6428 = vmatmul.mubr.msk.f32.vlgmr.msra.gmra.mrb[22].mxu1 %vm197_vm2, %v1495_v5 }
 0x482   :  { %6436 = vmatpush3.xpose.msk.msra.mxu1 %vm197_vm2, %v1653_v56  ;;  %6437 = vmatprep.mubr.msk.f32.mxu1 %vm6971_vm1, %v6970_v0 }
 0x483   :  { %6445 = vmatprep.subr.mxu1 %v6970_v0 }
 0x484   :  { %2592 = vrot.lane.b32.xlu1 %v7092_v32, %s6974_s19 }
 0x485   :  { %6438 = vmatmul.mubr.msk.f32.vlgmr.msra.gmra.mrb[24].mxu1 %vm197_vm2, %v1651_v58 }
 0x486   :  { %6446 = vmatpush3.xpose.msk.msra.mxu1 %vm197_vm2, %v1809_v59  ;;  %6447 = vmatprep.mubr.msk.f32.mxu1 %vm6971_vm1, %v6970_v0 }
 0x487   :  { %6455 = vmatprep.subr.mxu1 %v6970_v0 }
 0x489   :  { %6448 = vmatmul.mubr.msk.f32.vlgmr.msra.gmra.mrb[26].mxu1 %vm197_vm2, %v1807_v61 }
 0x48a   :  { %6456 = vmatpush3.xpose.msk.msra.mxu1 %vm197_vm2, %v1965_v60  ;;  %6457 = vmatprep.mubr.msk.f32.mxu1 %vm6971_vm1, %v6970_v0 }
 0x48b   :  { %6465 = vmatprep.subr.mxu1 %v6970_v0 }
 0x48d   :  { %6458 = vmatmul.mubr.msk.f32.vlgmr.msra.gmra.mrb[28].mxu1 %vm197_vm2, %v1963_v62  ;;  %2438 = vrot.lane.b32.xlu0 %v7082_v28, %s6974_s19 }
 0x48e   :  { %6467 = vmatprep.mubr.msk.f32.mxu1 %vm6971_vm1, %v6970_v0 }
 0x4f8   :  { %v2123_v1 = vpop.xlane.xlu0 %2122 }
 0x4f9   :  { %v2143_v4 = vsub.f32 %v7291_v12, %v2123_v1 }
 0x4fb   :  { %v2152_v6 = vmul.f32 1.442695, %v2143_v4 }
 0x4fc   :  { %v2129_v7 = vpop.xlane.xlu1 %2128 }
 0x4fd   :  { %6823 = vpow2.f32 %v2152_v6  ;;  %v2145_v8 = vsub.f32 %v7295_v18, %v2129_v7 }
 0x4ff   :  { %v2156_v10 = vmul.f32 1.442695, %v2145_v8 }
 0x500   :  { %v2285_v11 = vpop.permute.xlu1 %2284  ;;  %v2135_v13 = vpop.xlane.xlu0 %2134 }
 0x501   :  { %6825 = vpow2.f32 %v2156_v10  ;;  %v2147_v14 = vsub.f32 %v1958_v41, %v2135_v13  ;;  %6471 = vmatpush3.msra.mxu0 %v2285_v11 }
 0x502   :  { %6480 = vmatprep.subr.mxu0 %v6970_v0 }
 0x503   :  { %v2160_v15 = vmul.f32 1.442695, %v2147_v14 }
 0x504   :  { %v2141_v37 = vpop.xlane.xlu0 %2140  ;;  %v2593_v8 = vpop.permute.xlu1 %2592 }
 0x505   :  { %6827 = vpow2.f32 %v2160_v15  ;;  %v2149_v39 = vsub.f32 %v7310_v53, %v2141_v37 }
 0x507   :  { %v7351_v16 = vpop.eup %6823  ;;  %v2164_v41 = vmul.f32 1.442695, %v2149_v39 }
 0x508   :  { %v2169_v12 = vsel %vm819_vm3, %v7351_v16, 0.0  ;;  %v2439_v11 = vpop.permute.xlu0 %2438 }
 0x509   :  { %2170 = vadd.xlane.f32.xlu1 %v2169_v12  ;;  %6829 = vpow2.f32 %v2164_v41 }
 0x50b   :  { %v7355_v17 = vpop.eup %6825 }
 0x50c   :  { %v2175_v18 = vsel %vm819_vm3, %v7355_v17, 0.0 }
 0x50d   :  { %2176 = vadd.xlane.f32.xlu0 %v2175_v18 }
 0x50f   :  { %v7359_v19 = vpop.eup %6827 }
 0x510   :  { %v2181_v20 = vsel %vm819_vm3, %v7359_v19, 0.0 }
 0x511   :  { %2182 = vadd.xlane.f32.xlu1 %v2181_v20 }
 0x513   :  { %v7386_v45 = vpop.eup %6829 }
 0x514   :  { %v2187_v50 = vsel %vm819_vm3, %v7386_v45, 0.0 }
 0x522   :  { %2746 = vrot.lane.b32.xlu1 %v7103_v36, %s6974_s19 }
 0x523   :  { %3084 = vrot.lane.b32.xlu0 %v7065_v21, %s6975_s20 }
 0x526   :  { %3082 = vrot.lane.b32.xlu1 %v7160_v51, %s6976_s21 }
 0x527   :  { %3162 = vrot.lane.b32.xlu0 %v7069_v23, %s6975_s20 }
 0x52a   :  { %3160 = vrot.lane.b32.xlu1 %v7107_v38, %s6976_s21 }
 0x52e   :  { %3238 = vrot.lane.b32.xlu1 %v7116_v40, %s6976_s21 }
 0x532   :  { %3316 = vrot.lane.b32.xlu1 %v7125_v42, %s6976_s21 }
 0x536   :  { %3394 = vrot.lane.b32.xlu1 %v7134_v44, %s6976_s21 }
 0x53a   :  { %3472 = vrot.lane.b32.xlu1 %v7143_v46, %s6976_s21 }
 0x53e   :  { %3550 = vrot.lane.b32.xlu1 %v7152_v48, %s6976_s21 }
 0x541   :  { %v7384_v43 = vpop.f32.mrb[14].mxu1 }
 0x542   :  { %v6389_v47 = vpop.f32.mrb[15].mxu1  ;;  %3628 = vrot.lane.b32.xlu1 %v7163_v52, %s6976_s21 }
 0x545   :  { %v7390_v49 = vpop.f32.mrb[16].mxu1 }
 0x546   :  { %v6399_v53 = vpop.f32.mrb[17].mxu1  ;;  %2188 = vadd.xlane.f32.xlu0 %v2187_v50 }
 0x549   :  { %v7394_v54 = vpop.f32.mrb[18].mxu1 }
 0x54a   :  { %v6409_v55 = vpop.f32.mrb[19].mxu1 }
 0x54d   :  { %v7396_v57 = vpop.f32.mrb[20].mxu1 }
 0x54e   :  { %v6419_v56 = vpop.f32.mrb[21].mxu1 }
 0x554   :  { %v7398_v5 = vpop.f32.mrb[22].mxu1 }
 0x555   :  { %v6429_v58 = vpop.f32.mrb[23].mxu1  ;;  %v2118_v7 = vsel %vm819_vm3, %v7398_v5, -inf }
 0x558   :  { %v7400_v59 = vpop.f32.mrb[24].mxu1 }
 0x559   :  { %v6439_v61 = vpop.f32.mrb[25].mxu1  ;;  %v2124_v6 = vsel %vm819_vm3, %v7400_v59, -inf }
 0x55c   :  { %v7402_v60 = vpop.f32.mrb[26].mxu1  ;;  %3240 = vrot.lane.b32.xlu0 %v7074_v25, %s6975_s20 }
 0x55d   :  { %v6449_v62 = vpop.f32.mrb[27].mxu1  ;;  %v2130_v10 = vsel %vm819_vm3, %v7402_v60, -inf }
 0x560   :  { %v7406_v1 = vpop.f32.mrb[28].mxu1  ;;  %3318 = vrot.lane.b32.xlu0 %v7079_v27, %s6975_s20 }
 0x561   :  { %v6459_v4 = vpop.f32.mrb[29].mxu1  ;;  %v2136_v14 = vsel %vm819_vm3, %v7406_v1, -inf }
 0x564   :  { %3396 = vrot.lane.b32.xlu0 %v7084_v29, %s6975_s20 }
 0x566   :  { %2125 = vmax.xlane.f32.xlu1 %v2124_v6 }
 0x568   :  { %3474 = vrot.lane.b32.xlu0 %v7089_v31, %s6975_s20 }
 0x56c   :  { %3552 = vrot.lane.b32.xlu0 %v7094_v33, %s6975_s20 }
 0x570   :  { %3630 = vrot.lane.b32.xlu0 %v7099_v35, %s6975_s20 }
 0x58f   :  { %2119 = vmax.xlane.f32.xlu0 %v2118_v7 }
 0x593   :  { %2131 = vmax.xlane.f32.xlu0 %v2130_v10 }
 0x596   :  { %v2171_v13 = vpop.xlane.xlu1 %2170 }
 0x597   :  { %6831 = vrcp.f32 %v2171_v13  ;;  %2137 = vmax.xlane.f32.xlu0 %v2136_v14 }
 0x59a   :  { %v2177_v15 = vpop.xlane.xlu0 %2176 }
 0x59b   :  { %6833 = vrcp.f32 %v2177_v15 }
 0x59e   :  { %v2183_v12 = vpop.xlane.xlu1 %2182  ;;  %v3085_v50 = vpop.permute.xlu0 %3084 }
 0x59f   :  { %6835 = vrcp.f32 %v2183_v12 }
 0x5a1   :  { %v6832_v18 = vpop.eup %6831 }
 0x5a2   :  { %v2199_v20 = vmul.f32 %v6832_v18, %v7351_v16  ;;  %v2747_v47 = vpop.permute.xlu1 %2746  ;;  %v3163_v55 = vpop.permute.xlu0 %3162 }
 0x5a4   :  { %6473 = vmatmul.mubr.msk.f32.vlgmr.msra.gmra.mrb[34].mxu0 %vm819_vm3, %v2199_v20 }
 0x5a5   :  { %v6834_v37 = vpop.eup %6833  ;;  %6481 = vmatpush3.msra.mxu0 %v2439_v11  ;;  %6482 = vmatprep.mubr.msk.f32.mxu0 %vm6971_vm1, %v6970_v0 }
 0x5a6   :  { %v2201_v39 = vmul.f32 %v6834_v37, %v7355_v17  ;;  %6490 = vmatprep.subr.mxu0 %v6970_v0  ;;  %v3083_v17 = vpop.permute.xlu1 %3082 }
 0x5a8   :  { %6483 = vmatmul.mubr.msk.f32.vlgmr.msra.gmra.mrb[36].mxu0 %vm819_vm3, %v2201_v39 }
 0x5a9   :  { %v6836_v41 = vpop.eup %6835  ;;  %6491 = vmatpush3.msra.mxu0 %v2593_v8  ;;  %6492 = vmatprep.mubr.msk.f32.mxu0 %vm6971_vm1, %v6970_v0 }
 0x5aa   :  { %v2203_v16 = vmul.f32 %v6836_v41, %v7359_v19  ;;  %6500 = vmatprep.subr.mxu0 %v6970_v0  ;;  %v3161_v53 = vpop.permute.xlu1 %3160 }
 0x5ac   :  { %6493 = vmatmul.mubr.msk.f32.vlgmr.msra.gmra.mrb[38].mxu0 %vm819_vm3, %v2203_v16 }
 0x5ad   :  { %6501 = vmatpush3.msra.mxu0 %v2747_v47  ;;  %6502 = vmatprep.mubr.msk.f32.mxu0 %vm6971_vm1, %v6970_v0 }
 0x5ae   :  { %6537 = vmatprep.subr.mxu0 %v6970_v0  ;;  %v3239_v56 = vpop.permute.xlu1 %3238 }
 0x5b2   :  { %v3317_v61 = vpop.permute.xlu1 %3316 }
 0x5b6   :  { %v3395_v19 = vpop.permute.xlu1 %3394 }
 0x5ba   :  { %v3473_v7 = vpop.permute.xlu1 %3472 }
 0x5d3   :  { %v2189_v58 = vpop.xlane.xlu0 %2188 }
 0x5d4   :  { %6837 = vrcp.f32 %v2189_v58 }
 0x5d7   :  { %v3241_v6 = vpop.permute.xlu0 %3240 }
 0x5db   :  { %v3319_v8 = vpop.permute.xlu0 %3318 }
 0x5de   :  { %v6838_v62 = vpop.eup %6837 }
 0x5df   :  { %v2205_v4 = vmul.f32 %v6838_v62, %v7386_v45  ;;  %v3551_v45 = vpop.permute.xlu1 %3550  ;;  %v3397_v10 = vpop.permute.xlu0 %3396 }
 0x5e1   :  { %6503 = vmatmul.mubr.msk.f32.vlgmr.msra.gmra.mrb[40].mxu0 %vm819_vm3, %v2205_v4 }
 0x5e2   :  { %6538 = vmatpush3.xpose.msk.msra.mxu0 %vm197_vm2, %v3085_v50  ;;  %6539 = vmatprep.mubr.msk.f32.mxu0 %vm6971_vm1, %v6970_v0 }
 0x5e3   :  { %6542 = vmatprep.subr.mxu0 %v6970_v0  ;;  %v3629_v11 = vpop.permute.xlu1 %3628  ;;  %v3475_v13 = vpop.permute.xlu0 %3474 }
 0x5e5   :  { %6540 = vmatmul.mubr.msk.f32.vlgmr.msra.gmra.mrb[42].mxu0 %vm197_vm2, %v3083_v17 }
 0x5e6   :  { %6543 = vmatpush3.xpose.msk.msra.mxu0 %vm197_vm2, %v3163_v55  ;;  %6544 = vmatprep.mubr.msk.f32.mxu0 %vm6971_vm1, %v6970_v0 }
 0x5e7   :  { %6547 = vmatprep.subr.mxu0 %v6970_v0  ;;  %v3553_v18 = vpop.permute.xlu0 %3552 }
 0x5e9   :  { %6545 = vmatmul.mubr.msk.f32.vlgmr.msra.gmra.mrb[44].mxu0 %vm197_vm2, %v3161_v53 }
 0x5ea   :  { %6548 = vmatpush3.xpose.msk.msra.mxu0 %vm197_vm2, %v3241_v6  ;;  %6549 = vmatprep.mubr.msk.f32.mxu0 %vm6971_vm1, %v6970_v0 }
 0x5eb   :  { %6552 = vmatprep.subr.mxu0 %v6970_v0 }
 0x5ed   :  { %6550 = vmatmul.mubr.msk.f32.vlgmr.msra.gmra.mrb[46].mxu0 %vm197_vm2, %v3239_v56 }
 0x5ee   :  { %6553 = vmatpush3.xpose.msk.msra.mxu0 %vm197_vm2, %v3319_v8  ;;  %6554 = vmatprep.mubr.msk.f32.mxu0 %vm6971_vm1, %v6970_v0 }
 0x5ef   :  { %6557 = vmatprep.subr.mxu0 %v6970_v0 }
 0x5f1   :  { %6555 = vmatmul.mubr.msk.f32.vlgmr.msra.gmra.mrb[48].mxu0 %vm197_vm2, %v3317_v61 }
 0x5f2   :  { %6558 = vmatpush3.xpose.msk.msra.mxu0 %vm197_vm2, %v3397_v10  ;;  %6559 = vmatprep.mubr.msk.f32.mxu0 %vm6971_vm1, %v6970_v0 }
 0x5f3   :  { %v2126_v14 = vpop.xlane.xlu1 %2125  ;;  %6562 = vmatprep.subr.mxu0 %v6970_v0 }
 0x5f4   :  { %v2144_v15 = vsub.f32 %v7400_v59, %v2126_v14  ;;  %v3631_v59 = vpop.permute.xlu0 %3630 }
 0x5f5   :  { %6560 = vmatmul.mubr.msk.f32.vlgmr.msra.gmra.mrb[50].mxu0 %vm197_vm2, %v3395_v19 }
 0x5f6   :  { %v2154_v12 = vmul.f32 1.442695, %v2144_v15  ;;  %6563 = vmatpush3.xpose.msk.msra.mxu0 %vm197_vm2, %v3475_v13  ;;  %6564 = vmatprep.mubr.msk.f32.mxu0 %vm6971_vm1, %v6970_v0 }
 0x5f7   :  { %6567 = vmatprep.subr.mxu0 %v6970_v0 }
 0x5f8   :  { %6839 = vpow2.f32 %v2154_v12 }
 0x5f9   :  { %6565 = vmatmul.mubr.msk.f32.vlgmr.msra.gmra.mrb[52].mxu0 %vm197_vm2, %v3473_v7 }
 0x5fa   :  { %6568 = vmatpush3.xpose.msk.msra.mxu0 %vm197_vm2, %v3553_v18  ;;  %6569 = vmatprep.mubr.msk.f32.mxu0 %vm6971_vm1, %v6970_v0 }
 0x5fb   :  { %6572 = vmatprep.subr.mxu0 %v6970_v0 }
 0x5fd   :  { %6570 = vmatmul.mubr.msk.f32.vlgmr.msra.gmra.mrb[54].mxu0 %vm197_vm2, %v3551_v45 }
 0x5fe   :  { %6573 = vmatpush3.xpose.msk.msra.mxu0 %vm197_vm2, %v3631_v59  ;;  %6574 = vmatprep.mubr.msk.f32.mxu0 %vm6971_vm1, %v6970_v0 }
 0x5ff   :  { %6582 = vmatprep.subr.mxu0 %v6970_v0 }
 0x601   :  { %6575 = vmatmul.mubr.msk.f32.vlgmr.msra.gmra.mrb[56].mxu0 %vm197_vm2, %v3629_v11 }
 0x602   :  { %v7484_v20 = vpop.eup %6839  ;;  %6584 = vmatprep.mubr.msk.f32.mxu0 %vm6971_vm1, %v6970_v0 }
 0x603   :  { %v2172_v37 = vsel %vm819_vm3, %v7484_v20, 0.0 }
 0x604   :  { %2173 = vadd.xlane.f32.xlu0 %v2172_v37 }
 0x61c   :  { %v2120_v39 = vpop.xlane.xlu0 %2119 }
 0x61d   :  { %v2142_v41 = vsub.f32 %v7398_v5, %v2120_v39 }
 0x61f   :  { %v2150_v16 = vmul.f32 1.442695, %v2142_v41 }
 0x620   :  { %v2132_v47 = vpop.xlane.xlu0 %2131 }
 0x621   :  { %6841 = vpow2.f32 %v2150_v16  ;;  %v2146_v17 = vsub.f32 %v7402_v60, %v2132_v47 }
 0x623   :  { %v2158_v50 = vmul.f32 1.442695, %v2146_v17 }
 0x624   :  { %v2138_v53 = vpop.xlane.xlu0 %2137 }
 0x625   :  { %6843 = vpow2.f32 %v2158_v50  ;;  %v2148_v55 = vsub.f32 %v7406_v1, %v2138_v53 }
 0x627   :  { %v2162_v56 = vmul.f32 1.442695, %v2148_v55 }
 0x629   :  { %6845 = vpow2.f32 %v2162_v56 }
 0x62b   :  { %v6842_v58 = vpop.eup %6841 }
 0x62c   :  { %v2166_v61 = vsel %vm819_vm3, %v6842_v58, 0.0 }
 0x62d   :  { %2167 = vadd.xlane.f32.xlu1 %v2166_v61 }
 0x62f   :  { %v7494_v19 = vpop.eup %6843 }
 0x630   :  { %v2178_v5 = vsel %vm819_vm3, %v7494_v19, 0.0 }
 0x631   :  { %2179 = vadd.xlane.f32.xlu1 %v2178_v5 }
 0x633   :  { %v7498_v62 = vpop.eup %6845 }
 0x634   :  { %v2184_v60 = vsel %vm819_vm3, %v7498_v62, 0.0 }
 0x635   :  { %2185 = vadd.xlane.f32.xlu0 %v2184_v60 }
 0x642   :  { %2207 = vrot.lane.b32.xlu1 %v7067_v22, %s6974_s19 }
 0x646   :  { %2515 = vrot.lane.b32.xlu1 %v7087_v30, %s6974_s19 }
 0x64a   :  { %2669 = vrot.lane.b32.xlu1 %v7097_v34, %s6974_s19 }
 0x64b   :  { %2361 = vrot.lane.b32.xlu0 %v7077_v26, %s6974_s19 }
 0x677   :  { %v7510_v1 = vpop.f32.mrb[34].mxu0 }
 0x678   :  { %v6474_v4 = vpop.f32.mrb[35].mxu0 }
 0x67b   :  { %v7512_v6 = vpop.f32.mrb[36].mxu0 }
 0x67c   :  { %v6484_v7 = vpop.f32.mrb[37].mxu0 }
 0x67f   :  { %v7514_v8 = vpop.f32.mrb[38].mxu0 }
 0x680   :  { %v6494_v45 = vpop.f32.mrb[39].mxu0 }
 0x691   :  { %v2174_v12 = vpop.xlane.xlu0 %2173 }
 0x6b4   :  { %v7516_v10 = vpop.f32.mrb[40].mxu0 }
 0x6b5   :  { %v6504_v11 = vpop.f32.mrb[41].mxu0 }
 0x6b8   :  { %v7518_v13 = vpop.f32.mrb[42].mxu0 }
 0x6b9   :  { %v6541_v14 = vpop.f32.mrb[43].mxu0  ;;  %v3706_v15 = vsel %vm819_vm3, %v7518_v13, -inf }
 0x6ba   :  { %v2168_v18 = vpop.xlane.xlu1 %2167  ;;  %3707 = vmax.xlane.f32.xlu0 %v3706_v15 }
 0x6bb   :  { %6847 = vrcp.f32 %v2168_v18 }
 0x6bc   :  { %v7522_v59 = vpop.f32.mrb[44].mxu0  ;;  %6849 = vrcp.f32 %v2174_v12 }
 0x6bd   :  { %v6546_v37 = vpop.f32.mrb[45].mxu0  ;;  %v3709_v39 = vsel %vm819_vm3, %v7522_v59, -inf }
 0x6be   :  { %v2180_v41 = vpop.xlane.xlu1 %2179  ;;  %3710 = vmax.xlane.f32.xlu1 %v3709_v39 }
 0x6bf   :  { %6851 = vrcp.f32 %v2180_v41 }
 0x6c0   :  { %v7526_v16 = vpop.f32.mrb[46].mxu0 }
 0x6c1   :  { %v6551_v47 = vpop.f32.mrb[47].mxu0  ;;  %v3712_v17 = vsel %vm819_vm3, %v7526_v16, -inf }
 0x6c2   :  { %v2208_v50 = vpop.permute.xlu1 %2207  ;;  %v2186_v53 = vpop.xlane.xlu0 %2185  ;;  %3713 = vmax.xlane.f32.xlu0 %v3712_v17 }
 0x6c3   :  { %6466 = vmatpush3.msra.mxu1 %v2208_v50  ;;  %6853 = vrcp.f32 %v2186_v53 }
 0x6c4   :  { %v7530_v55 = vpop.f32.mrb[48].mxu0  ;;  %6475 = vmatprep.subr.mxu1 %v6970_v0 }
 0x6c5   :  { %v6848_v56 = vpop.eup %6847  ;;  %v6556_v61 = vpop.f32.mrb[49].mxu0  ;;  %v3715_v5 = vsel %vm819_vm3, %v7530_v55, -inf }
 0x6c6   :  { %v2198_v60 = vmul.f32 %v6848_v56, %v6842_v58  ;;  %v2362_v4 = vpop.permute.xlu0 %2361  ;;  %3716 = vmax.xlane.f32.xlu0 %v3715_v5  ;;  %v6850_v7 = vpop.eup %6849 }
 0x6c7   :  { %v2200_v15 = vmul.f32 %v6850_v7, %v7484_v20  ;;  %v2516_v12 = vpop.permute.xlu1 %2515  ;;  %v1492_v7 = vld [vmem:[%s7904_s2] sm:$0xff] }
 0x6c8   :  { %6468 = vmatmul.mubr.msk.f32.vlgmr.msra.gmra.mrb[30].mxu1 %vm819_vm3, %v2198_v60  ;;  %v7536_v45 = vpop.f32.mrb[50].mxu0  ;;  %v2823_v60 = vld [vmem:[%s7904_s2 + $0x18] sm:$0xff] }
 0x6c9   :  { %6476 = vmatpush3.msra.mxu1 %v2362_v4  ;;  %v6561_v11 = vpop.f32.mrb[51].mxu0  ;;  %v3718_v14 = vsel %vm819_vm3, %v7536_v45, -inf  ;;  %6477 = vmatprep.mubr.msk.f32.mxu1 %vm6971_vm1, %v6970_v0  ;;  %v6852_v58 = vpop.eup %6851 }
 0x6ca   :  { %3719 = vmax.xlane.f32.xlu1 %v3718_v14  ;;  %6485 = vmatprep.subr.mxu1 %v6970_v0  ;;  %v2202_v41 = vmul.f32 %v6852_v58, %v7494_v19  ;;  %v1493_v11 = vld [vmem:[%s7904_s2 + $0x8] sm:$0xff] }
 0x6cb   :  { %v2670_v47 = vpop.permute.xlu1 %2669  ;;  %v7587_v14 = vpack.c.bf16 %v1493_v11, %v1492_v7 }
 0x6cc   :  { %6478 = vmatmul.mubr.msk.f32.vlgmr.msra.gmra.mrb[32].mxu1 %vm819_vm3, %v2200_v15  ;;  %v7545_v18 = vpop.f32.mrb[52].mxu0 }
 0x6cd   :  { %6486 = vmatpush3.msra.mxu1 %v2516_v12  ;;  %v6566_v37 = vpop.f32.mrb[53].mxu0  ;;  %v3721_v39 = vsel %vm819_vm3, %v7545_v18, -inf  ;;  %6487 = vmatprep.mubr.msk.f32.mxu1 %vm6971_vm1, %v6970_v0  ;;  %v6854_v20 = vpop.eup %6853 }
 0x6ce   :  { %3722 = vmax.xlane.f32.xlu0 %v3721_v39  ;;  %6495 = vmatprep.subr.mxu1 %v6970_v0  ;;  %v2204_v56 = vmul.f32 %v6854_v20, %v7498_v62  ;;  %v2822_v62 = vld [vmem:[%s7904_s2 + $0x10] sm:$0xff] }
 0x6cf   :  { %v6737_v4 = vpack.c.bf16 %v2823_v60, %v2822_v62 }
 0x6d0   :  { %6488 = vmatmul.mubr.msk.f32.vlgmr.msra.gmra.mrb[34].mxu1 %vm819_vm3, %v2202_v41  ;;  %v7554_v17 = vpop.f32.mrb[54].mxu0 }
 0x6d1   :  { %6496 = vmatpush3.msra.mxu1 %v2670_v47  ;;  %v6571_v50 = vpop.f32.mrb[55].mxu0  ;;  %v3724_v53 = vsel %vm819_vm3, %v7554_v17, -inf  ;;  %6497 = vmatprep.mubr.msk.f32.mxu1 %vm6971_vm1, %v6970_v0 }
 0x6d2   :  { %3725 = vmax.xlane.f32.xlu1 %v3724_v53  ;;  %6738 = vmatprep.subr.bf16.mxu1 %v6737_v4 }
 0x6d4   :  { %6498 = vmatmul.mubr.msk.f32.vlgmr.msra.gmra.mrb[36].mxu1 %vm819_vm3, %v2204_v56  ;;  %v3702_v19 = vpop.f32.mrb[56].mxu0 }
 0x6d5   :  { %v6576_v61 = vpop.f32.mrb[57].mxu0  ;;  %v3727_v5 = vsel %vm819_vm3, %v3702_v19, -inf  ;;  %6740 = vmatpush3.bf16.msra.mxu1 %v6737_v4 }
 0x6d6   :  { %3728 = vmax.xlane.f32.xlu0 %v3727_v5  ;;  %6742 = vmatprep.subr.bf16.mxu1 %v7587_v14 }
 0x6e3   :  { %3794 = vrot.lane.b32.xlu1 %v7067_v22, %s6976_s21 }
 0x6e7   :  { %3946 = vrot.lane.b32.xlu1 %v7077_v26, %s6976_s21 }
 0x6eb   :  { %4022 = vrot.lane.b32.xlu1 %v7082_v28, %s6976_s21 }
 0x6ec   :  { %3870 = vrot.lane.b32.xlu0 %v7072_v24, %s6976_s21 }
 0x6ef   :  { %4174 = vrot.lane.b32.xlu1 %v7092_v32, %s6976_s21 }
 0x6f0   :  { %4098 = vrot.lane.b32.xlu0 %v7087_v30, %s6976_s21 }
 0x747   :  { %v3708_v15 = vpop.xlane.xlu0 %3707 }
 0x748   :  { %v3730_v12 = vsub.f32 %v7518_v13, %v3708_v15 }
 0x74a   :  { %v3738_v58 = vmul.f32 1.442695, %v3730_v12 }
 0x74b   :  { %v3711_v37 = vpop.xlane.xlu1 %3710 }
 0x74c   :  { %6855 = vpow2.f32 %v3738_v58  ;;  %v3731_v39 = vsub.f32 %v7522_v59, %v3711_v37 }
 0x74e   :  { %v3740_v41 = vmul.f32 1.442695, %v3731_v39 }
 0x74f   :  { %v3714_v20 = vpop.xlane.xlu0 %3713 }
 0x750   :  { %6857 = vpow2.f32 %v3740_v41  ;;  %v3732_v47 = vsub.f32 %v7526_v16, %v3714_v20 }
 0x752   :  { %v3742_v50 = vmul.f32 1.442695, %v3732_v47 }
 0x753   :  { %v3717_v53 = vpop.xlane.xlu0 %3716 }
 0x754   :  { %6859 = vpow2.f32 %v3742_v50  ;;  %v3733_v56 = vsub.f32 %v7530_v55, %v3717_v53 }
 0x756   :  { %v7594_v61 = vpop.eup %6855  ;;  %v3744_v5 = vmul.f32 1.442695, %v3733_v56 }
 0x757   :  { %v3720_v62 = vpop.xlane.xlu1 %3719  ;;  %v3754_v13 = vsel %vm819_vm3, %v7594_v61, 0.0 }
 0x758   :  { %6861 = vpow2.f32 %v3744_v5  ;;  %v3734_v59 = vsub.f32 %v7536_v45, %v3720_v62  ;;  %3755 = vadd.xlane.f32.xlu1 %v3754_v13 }
 0x75a   :  { %v7599_v60 = vpop.eup %6857  ;;  %v3746_v4 = vmul.f32 1.442695, %v3734_v59 }
 0x75b   :  { %v3723_v16 = vpop.xlane.xlu0 %3722  ;;  %v3757_v7 = vsel %vm819_vm3, %v7599_v60, 0.0 }
 0x75c   :  { %6863 = vpow2.f32 %v3746_v4  ;;  %v3735_v55 = vsub.f32 %v7545_v18, %v3723_v16  ;;  %3758 = vadd.xlane.f32.xlu0 %v3757_v7 }
 0x75e   :  { %v7604_v11 = vpop.eup %6859  ;;  %v3748_v15 = vmul.f32 1.442695, %v3735_v55 }
 0x75f   :  { %v3726_v12 = vpop.xlane.xlu1 %3725  ;;  %v3760_v58 = vsel %vm819_vm3, %v7604_v11, 0.0 }
 0x760   :  { %6865 = vpow2.f32 %v3748_v15  ;;  %v3736_v45 = vsub.f32 %v7554_v17, %v3726_v12  ;;  %3761 = vadd.xlane.f32.xlu1 %v3760_v58 }
 0x762   :  { %v7609_v37 = vpop.eup %6861  ;;  %v3750_v39 = vmul.f32 1.442695, %v3736_v45 }
 0x763   :  { %v3729_v41 = vpop.xlane.xlu0 %3728  ;;  %v3763_v20 = vsel %vm819_vm3, %v7609_v37, 0.0 }
 0x764   :  { %6867 = vpow2.f32 %v3750_v39  ;;  %v3737_v18 = vsub.f32 %v3702_v19, %v3729_v41  ;;  %3764 = vadd.xlane.f32.xlu0 %v3763_v20 }
 0x766   :  { %v7613_v47 = vpop.eup %6863  ;;  %v3752_v50 = vmul.f32 1.442695, %v3737_v18 }
 0x767   :  { %v3871_v53 = vpop.permute.xlu0 %3870  ;;  %v3766_v56 = vsel %vm819_vm3, %v7613_v47, 0.0 }
 0x768   :  { %6869 = vpow2.f32 %v3752_v50  ;;  %3767 = vadd.xlane.f32.xlu1 %v3766_v56  ;;  %6583 = vmatpush3.msra.mxu0 %v3871_v53 }
 0x769   :  { %6592 = vmatprep.subr.mxu0 %v6970_v0 }
 0x76a   :  { %v7618_v17 = vpop.eup %6865 }
 0x76b   :  { %v3769_v5 = vsel %vm819_vm3, %v7618_v17, 0.0 }
 0x76c   :  { %3770 = vadd.xlane.f32.xlu0 %v3769_v5 }
 0x76e   :  { %v7622_v19 = vpop.eup %6867 }
 0x76f   :  { %v3772_v62 = vsel %vm819_vm3, %v7622_v19, 0.0 }
 0x770   :  { %3773 = vadd.xlane.f32.xlu1 %v3772_v62 }
 0x772   :  { %v7626_v13 = vpop.eup %6869 }
 0x773   :  { %v3775_v59 = vsel %vm819_vm3, %v7626_v13, 0.0 }
 0x774   :  { %3776 = vadd.xlane.f32.xlu0 %v3775_v59 }
 0x781   :  { %4326 = vrot.lane.b32.xlu1 %v7103_v36, %s6976_s21 }
 0x785   :  { %4541 = vrot.lane.b32.xlu1 %v7160_v51, %s6977_s30 }
 0x789   :  { %4619 = vrot.lane.b32.xlu1 %v7107_v38, %s6977_s30 }
 0x78a   :  { %4250 = vrot.lane.b32.xlu0 %v7097_v34, %s6976_s21 }
 0x78d   :  { %4697 = vrot.lane.b32.xlu1 %v7116_v40, %s6977_s30  ;;  %v3795_v40 = vpop.permute.xlu1 %3794 }
 0x78e   :  { %4543 = vrot.lane.b32.xlu0 %v7065_v21, %s6969_s26 }
 0x791   :  { %4775 = vrot.lane.b32.xlu1 %v7125_v42, %s6977_s30 }
 0x792   :  { %4621 = vrot.lane.b32.xlu0 %v7069_v23, %s6969_s26 }
 0x795   :  { %4933 = vrot.lane.b32.xlu1 %v7089_v31, %s6969_s26 }
 0x796   :  { %4699 = vrot.lane.b32.xlu0 %v7074_v25, %s6969_s26 }
 0x799   :  { %4931 = vrot.lane.b32.xlu1 %v7143_v46, %s6977_s30  ;;  %v4099_v46 = vpop.permute.xlu0 %4098 }
 0x79a   :  { %4777 = vrot.lane.b32.xlu0 %v7079_v27, %s6969_s26 }
 0x79b   :  { %v2279_v38 = vpop.f32.mrb[30].mxu1 }
 0x79c   :  { %v6469_v21 = vpop.f32.mrb[31].mxu1  ;;  %6509 = vmatprep.mubr.msk.f32.mxu1 %vm197_vm2, %v2279_v38 }
 0x79d   :  { %6510 = vmatmul.mubr.msk.f32.vlgmr.msra.gmra.mrb[38].mxu1 %vm197_vm2, %v7510_v1  ;;  %5089 = vrot.lane.b32.xlu1 %v7099_v35, %s6969_s26 }
 0x79e   :  { %4855 = vrot.lane.b32.xlu0 %v7084_v29, %s6969_s26  ;;  %6744 = vmatpush3.bf16.msra.mxu1 %v7587_v14 }
 0x79f   :  { %v2433_v23 = vpop.f32.mrb[32].mxu1  ;;  %6577 = vmatprep.subr.mxu1 %v6970_v0 }
 0x7a0   :  { %v6479_v25 = vpop.f32.mrb[33].mxu1  ;;  %6512 = vmatprep.mubr.msk.f32.mxu1 %vm197_vm2, %v2433_v23 }
 0x7a1   :  { %6513 = vmatmul.mubr.msk.f32.gmra.mrb[40].mxu1 %vm197_vm2, %v7512_v6  ;;  %5087 = vrot.lane.b32.xlu1 %v7163_v52, %s6977_s30 }
 0x7a2   :  { %4853 = vrot.lane.b32.xlu0 %v7134_v44, %s6977_s30 }
 0x7a3   :  { %v2587_v27 = vpop.f32.mrb[34].mxu1 }
 0x7a4   :  { %v6489_v31 = vpop.f32.mrb[35].mxu1  ;;  %6515 = vmatprep.mubr.msk.f32.mxu1 %vm197_vm2, %v2587_v27 }
 0x7a5   :  { %6516 = vmatmul.mubr.msk.f32.gmra.mrb[42].mxu1 %vm197_vm2, %v7514_v8 }
 0x7a6   :  { %5011 = vrot.lane.b32.xlu0 %v7094_v33, %s6969_s26  ;;  %v3947_v33 = vpop.permute.xlu1 %3946 }
 0x7a7   :  { %v2741_v29 = vpop.f32.mrb[36].mxu1 }
 0x7a8   :  { %v6499_v35 = vpop.f32.mrb[37].mxu1  ;;  %6518 = vmatprep.mubr.msk.f32.mxu1 %vm197_vm2, %v2741_v29 }
 0x7a9   :  { %6519 = vmatmul.mubr.msk.f32.gmra.mrb[44].mxu1 %vm197_vm2, %v7516_v10 }
 0x7aa   :  { %6525 = vmatprep.mubr.msk.f32.mxu1 %vm197_vm2, %v7384_v43  ;;  %5009 = vrot.lane.b32.xlu0 %v7152_v48, %s6977_s30  ;;  %v4023_v42 = vpop.permute.xlu1 %4022 }
 0x7ad   :  { %6526 = vmatmul.mubr.msk.f32.vlgmr.msra.gmra.mrb[38].mxu1 %vm197_vm2, %v7283_v3 }
 0x7ae   :  { %6578 = vmatpush3.msra.mxu1 %v3795_v40  ;;  %6528 = vmatprep.mubr.msk.f32.mxu1 %vm197_vm2, %v7390_v49  ;;  %v4175_v44 = vpop.permute.xlu1 %4174 }
 0x7af   :  { %6587 = vmatprep.subr.mxu1 %v6970_v0 }
 0x7b1   :  { %6529 = vmatmul.mubr.msk.f32.gmra.mrb[40].mxu1 %vm197_vm2, %v7285_v63 }
 0x7b2   :  { %6531 = vmatprep.mubr.msk.f32.mxu1 %vm197_vm2, %v7394_v54 }
 0x7b5   :  { %6532 = vmatmul.mubr.msk.f32.gmra.mrb[42].mxu1 %vm197_vm2, %v7287_v2 }
 0x7b6   :  { %6534 = vmatprep.mubr.msk.f32.mxu1 %vm197_vm2, %v7396_v57 }
 0x7b9   :  { %6535 = vmatmul.mubr.msk.f32.gmra.mrb[44].mxu1 %vm197_vm2, %v7289_v9 }
 0x7ba   :  { %6579 = vmatprep.mubr.msk.f32.mxu1 %vm6971_vm1, %v6970_v0 }
 0x7e5   :  { %v3756_v48 = vpop.xlane.xlu1 %3755 }
 0x7e6   :  { %6871 = vrcp.f32 %v3756_v48 }
 0x7e9   :  { %v3759_v51 = vpop.xlane.xlu0 %3758 }
 0x7ea   :  { %6873 = vrcp.f32 %v3759_v51 }
 0x7ed   :  { %v3762_v52 = vpop.xlane.xlu1 %3761 }
 0x7ee   :  { %6875 = vrcp.f32 %v3762_v52 }
 0x7f0   :  { %v6872_v3 = vpop.eup %6871 }
 0x7f1   :  { %v3786_v63 = vmul.f32 %v6872_v3, %v7594_v61  ;;  %v3765_v2 = vpop.xlane.xlu0 %3764  ;;  %v4402_v61 = vld [vmem:[%s7904_s2 + $0x20] sm:$0xff] }
 0x7f2   :  { %6877 = vrcp.f32 %v3765_v2 }
 0x7f3   :  { %6580 = vmatmul.mubr.msk.f32.vlgmr.msra.gmra.mrb[46].mxu1 %vm819_vm3, %v3786_v63 }
 0x7f4   :  { %v6874_v9 = vpop.eup %6873  ;;  %6588 = vmatpush3.msra.mxu1 %v3947_v33  ;;  %6589 = vmatprep.mubr.msk.f32.mxu1 %vm6971_vm1, %v6970_v0 }
 0x7f5   :  { %v3787_v43 = vmul.f32 %v6874_v9, %v7599_v60  ;;  %v3768_v49 = vpop.xlane.xlu1 %3767  ;;  %6597 = vmatprep.subr.mxu1 %v6970_v0  ;;  %v4403_v60 = vld [vmem:[%s7904_s2 + $0x28] sm:$0xff] }
 0x7f6   :  { %6879 = vrcp.f32 %v3768_v49  ;;  %v6745_v55 = vpack.c.bf16 %v4403_v60, %v4402_v61 }
 0x7f7   :  { %6585 = vmatmul.mubr.msk.f32.vlgmr.msra.gmra.mrb[58].mxu0 %vm819_vm3, %v3787_v43 }
 0x7f8   :  { %v6876_v54 = vpop.eup %6875  ;;  %6593 = vmatpush3.msra.mxu0 %v4023_v42  ;;  %6594 = vmatprep.mubr.msk.f32.mxu0 %vm6971_vm1, %v6970_v0 }
 0x7f9   :  { %v3788_v57 = vmul.f32 %v6876_v54, %v7604_v11  ;;  %v3771_v1 = vpop.xlane.xlu0 %3770  ;;  %6602 = vmatprep.subr.mxu0 %v6970_v0 }
 0x7fa   :  { %6881 = vrcp.f32 %v3771_v1 }
 0x7fb   :  { %6590 = vmatmul.mubr.msk.f32.vlgmr.msra.gmra.mrb[48].mxu1 %vm819_vm3, %v3788_v57 }
 0x7fc   :  { %v6878_v6 = vpop.eup %6877  ;;  %6598 = vmatpush3.msra.mxu1 %v4099_v46  ;;  %6599 = vmatprep.mubr.msk.f32.mxu1 %vm6971_vm1, %v6970_v0 }
 0x7fd   :  { %v3789_v8 = vmul.f32 %v6878_v6, %v7609_v37  ;;  %v3774_v10 = vpop.xlane.xlu1 %3773  ;;  %6607 = vmatprep.subr.mxu1 %v6970_v0 }
 0x7fe   :  { %6883 = vrcp.f32 %v3774_v10 }
 0x7ff   :  { %6595 = vmatmul.mubr.msk.f32.vlgmr.msra.gmra.mrb[60].mxu0 %vm819_vm3, %v3789_v8 }
 0x800   :  { %v6880_v14 = vpop.eup %6879  ;;  %6603 = vmatpush3.msra.mxu0 %v4175_v44  ;;  %6604 = vmatprep.mubr.msk.f32.mxu0 %vm6971_vm1, %v6970_v0 }
 0x801   :  { %v3790_v4 = vmul.f32 %v6880_v14, %v7613_v47  ;;  %v4327_v16 = vpop.permute.xlu1 %4326  ;;  %v3777_v7 = vpop.xlane.xlu0 %3776  ;;  %6612 = vmatprep.subr.mxu0 %v6970_v0 }
 0x802   :  { %6885 = vrcp.f32 %v3777_v7 }
 0x803   :  { %6600 = vmatmul.mubr.msk.f32.vlgmr.msra.gmra.mrb[50].mxu1 %vm819_vm3, %v3790_v4 }
 0x804   :  { %v6882_v11 = vpop.eup %6881  ;;  %6609 = vmatprep.mubr.msk.f32.mxu1 %vm6971_vm1, %v6970_v0 }
 0x805   :  { %v3791_v15 = vmul.f32 %v6882_v11, %v7618_v17  ;;  %v4542_v12 = vpop.permute.xlu1 %4541  ;;  %v4251_v58 = vpop.permute.xlu0 %4250 }
 0x806   :  { %6608 = vmatpush3.msra.mxu1 %v4251_v58 }
 0x807   :  { %6605 = vmatmul.mubr.msk.f32.vlgmr.msra.gmra.mrb[62].mxu0 %vm819_vm3, %v3791_v15  ;;  %6746 = vmatprep.subr.bf16.mxu1 %v6745_v55 }
 0x808   :  { %v6884_v45 = vpop.eup %6883  ;;  %6613 = vmatpush3.msra.mxu0 %v4327_v16  ;;  %6614 = vmatprep.mubr.msk.f32.mxu0 %vm6971_vm1, %v6970_v0 }
 0x809   :  { %v3792_v37 = vmul.f32 %v6884_v45, %v7622_v19  ;;  %v4620_v39 = vpop.permute.xlu1 %4619  ;;  %v4544_v41 = vpop.permute.xlu0 %4543  ;;  %6633 = vmatprep.subr.mxu0 %v6970_v0 }
 0x80b   :  { %6610 = vmatmul.mubr.msk.f32.vlgmr.msra.gmra.mrb[52].mxu1 %vm819_vm3, %v3792_v37 }
 0x80c   :  { %v6886_v20 = vpop.eup %6885  ;;  %6748 = vmatpush3.bf16.msra.mxu1 %v6745_v55 }
 0x80d   :  { %v3793_v18 = vmul.f32 %v6886_v20, %v7626_v13  ;;  %v4698_v47 = vpop.permute.xlu1 %4697  ;;  %6653 = vmatprep.subr.mxu1 %v6970_v0  ;;  %v4622_v50 = vpop.permute.xlu0 %4621 }
 0x80f   :  { %6615 = vmatmul.mubr.msk.f32.vlgmr.msra.gmra.mrb[64].mxu0 %vm819_vm3, %v3793_v18 }
 0x810   :  { %6634 = vmatpush3.xpose.msk.msra.mxu0 %vm197_vm2, %v4544_v41  ;;  %6635 = vmatprep.mubr.msk.f32.mxu0 %vm6971_vm1, %v6970_v0 }
 0x811   :  { %v4776_v53 = vpop.permute.xlu1 %4775  ;;  %6638 = vmatprep.subr.mxu0 %v6970_v0  ;;  %v4700_v56 = vpop.permute.xlu0 %4699 }
 0x813   :  { %6636 = vmatmul.mubr.msk.f32.vlgmr.msra.gmra.mrb[66].mxu0 %vm197_vm2, %v4542_v12 }
 0x814   :  { %6639 = vmatpush3.xpose.msk.msra.mxu0 %vm197_vm2, %v4622_v50  ;;  %6640 = vmatprep.mubr.msk.f32.mxu0 %vm6971_vm1, %v6970_v0 }
 0x815   :  { %v4934_v17 = vpop.permute.xlu1 %4933  ;;  %6643 = vmatprep.subr.mxu0 %v6970_v0  ;;  %v4778_v19 = vpop.permute.xlu0 %4777 }
 0x817   :  { %6641 = vmatmul.mubr.msk.f32.vlgmr.msra.gmra.mrb[68].mxu0 %vm197_vm2, %v4620_v39 }
 0x818   :  { %6644 = vmatpush3.xpose.msk.msra.mxu0 %vm197_vm2, %v4700_v56  ;;  %6645 = vmatprep.mubr.msk.f32.mxu0 %vm6971_vm1, %v6970_v0 }
 0x819   :  { %6648 = vmatprep.subr.mxu0 %v6970_v0  ;;  %v4932_v5 = vpop.permute.xlu1 %4931  ;;  %v4856_v23 = vpop.permute.xlu0 %4855 }
 0x81b   :  { %6646 = vmatmul.mubr.msk.f32.vlgmr.msra.gmra.mrb[70].mxu0 %vm197_vm2, %v4698_v47 }
 0x81c   :  { %6649 = vmatpush3.xpose.msk.msra.mxu0 %vm197_vm2, %v4778_v19  ;;  %6650 = vmatprep.mubr.msk.f32.mxu0 %vm6971_vm1, %v6970_v0 }
 0x81d   :  { %6658 = vmatprep.subr.mxu0 %v6970_v0  ;;  %v5090_v62 = vpop.permute.xlu1 %5089  ;;  %v4854_v46 = vpop.permute.xlu0 %4853 }
 0x81f   :  { %6651 = vmatmul.mubr.msk.f32.vlgmr.msra.gmra.mrb[72].mxu0 %vm197_vm2, %v4776_v53 }
 0x820   :  { %6659 = vmatpush3.xpose.msk.msra.mxu0 %vm197_vm2, %v4934_v17  ;;  %6660 = vmatprep.mubr.msk.f32.mxu0 %vm6971_vm1, %v6970_v0 }
 0x821   :  { %6668 = vmatprep.subr.mxu0 %v6970_v0  ;;  %v5088_v13 = vpop.permute.xlu1 %5087  ;;  %v5012_v63 = vpop.permute.xlu0 %5011 }
 0x823   :  { %6661 = vmatmul.mubr.msk.f32.vlgmr.msra.gmra.mrb[74].mxu0 %vm197_vm2, %v4932_v5 }
 0x824   :  { %6669 = vmatpush3.xpose.msk.msra.mxu0 %vm197_vm2, %v5090_v62  ;;  %6670 = vmatprep.mubr.msk.f32.mxu0 %vm6971_vm1, %v6970_v0 }
 0x825   :  { %6678 = vmatprep.subr.mxu0 %v6970_v0  ;;  %v5010_v49 = vpop.permute.xlu0 %5009 }
 0x827   :  { %6671 = vmatmul.mubr.msk.f32.vlgmr.msra.gmra.mrb[76].mxu0 %vm197_vm2, %v5088_v13 }
 0x828   :  { %6680 = vmatprep.mubr.msk.f32.mxu0 %vm6971_vm1, %v6970_v0 }
 0x8c6   :  { %v3866_v59 = vpop.f32.mrb[46].mxu1 }
 0x8c7   :  { %v6581_v38 = vpop.f32.mrb[47].mxu1  ;;  %6621 = vmatprep.mubr.msk.f32.mxu1 %vm197_vm2, %v3866_v59 }
 0x8ca   :  { %v3942_v21 = vpop.f32.mrb[58].mxu0 }
 0x8cb   :  { %v6586_v25 = vpop.f32.mrb[59].mxu0  ;;  %6622 = vmatmul.mubr.msk.f32.vlgmr.msra.gmra.mrb[38].mxu1 %vm197_vm2, %v3942_v21 }
 0x8cc   :  { %6654 = vmatpush3.xpose.msk.msra.mxu1 %vm197_vm2, %v4856_v23 }
 0x8cd   :  { %6663 = vmatprep.subr.mxu1 %v6970_v0 }
 0x8ce   :  { %v4018_v27 = vpop.f32.mrb[48].mxu1 }
 0x8cf   :  { %v6591_v31 = vpop.f32.mrb[49].mxu1  ;;  %6624 = vmatprep.mubr.msk.f32.mxu1 %vm197_vm2, %v4018_v27 }
 0x8d2   :  { %v4094_v29 = vpop.f32.mrb[60].mxu0 }
 0x8d3   :  { %v6596_v35 = vpop.f32.mrb[61].mxu0  ;;  %6625 = vmatmul.mubr.msk.f32.gmra.mrb[40].mxu1 %vm197_vm2, %v4094_v29 }
 0x8d6   :  { %v4170_v40 = vpop.f32.mrb[50].mxu1 }
 0x8d7   :  { %v6601_v33 = vpop.f32.mrb[51].mxu1  ;;  %6627 = vmatprep.mubr.msk.f32.mxu1 %vm197_vm2, %v4170_v40 }
 0x8da   :  { %v4246_v42 = vpop.f32.mrb[62].mxu0 }
 0x8db   :  { %v6606_v44 = vpop.f32.mrb[63].mxu0  ;;  %6628 = vmatmul.mubr.msk.f32.gmra.mrb[42].mxu1 %vm197_vm2, %v4246_v42 }
 0x8de   :  { %v4322_v48 = vpop.f32.mrb[52].mxu1 }
 0x8df   :  { %v6611_v51 = vpop.f32.mrb[53].mxu1  ;;  %6630 = vmatprep.mubr.msk.f32.mxu1 %vm197_vm2, %v4322_v48 }
 0x8e2   :  { %v4398_v52 = vpop.f32.mrb[64].mxu0 }
 0x8e3   :  { %v6616_v3 = vpop.f32.mrb[65].mxu0  ;;  %6631 = vmatmul.mubr.msk.f32.gmra.mrb[44].mxu1 %vm197_vm2, %v4398_v52 }
 0x8e4   :  { %6655 = vmatprep.mubr.msk.f32.mxu1 %vm6971_vm1, %v6970_v0 }
 0x8e6   :  { %v7783_v2 = vpop.f32.mrb[66].mxu0 }
 0x8e7   :  { %v6637_v9 = vpop.f32.mrb[67].mxu0  ;;  %6656 = vmatmul.mubr.msk.f32.vlgmr.msra.gmra.mrb[54].mxu1 %vm197_vm2, %v4854_v46  ;;  %v5165_v43 = vsel %vm819_vm3, %v7783_v2, -inf }
 0x8e8   :  { %6664 = vmatpush3.xpose.msk.msra.mxu1 %vm197_vm2, %v5012_v63  ;;  %5166 = vmax.xlane.f32.xlu0 %v5165_v43 }
 0x8e9   :  { %6665 = vmatprep.mubr.msk.f32.mxu1 %vm6971_vm1, %v6970_v0  ;;  %6673 = vmatprep.subr.mxu1 %v6970_v0 }
 0x8ea   :  { %v4693_v54 = vpop.f32.mrb[68].mxu0 }
 0x8eb   :  { %v6642_v57 = vpop.f32.mrb[69].mxu0  ;;  %6666 = vmatmul.mubr.msk.f32.vlgmr.msra.gmra.mrb[56].mxu1 %vm197_vm2, %v5010_v49  ;;  %v5168_v1 = vsel %vm819_vm3, %v4693_v54, -inf }
 0x8ec   :  { %5169 = vmax.xlane.f32.xlu1 %v5168_v1  ;;  %6675 = vmatprep.mubr.msk.f32.mxu1 %vm6971_vm1, %v6970_v0 }
 0x8ee   :  { %v4771_v6 = vpop.f32.mrb[70].mxu0 }
 0x8ef   :  { %v6647_v8 = vpop.f32.mrb[71].mxu0  ;;  %v5171_v10 = vsel %vm819_vm3, %v4771_v6, -inf }
 0x8f0   :  { %5172 = vmax.xlane.f32.xlu0 %v5171_v10 }
 0x8f2   :  { %v4849_v14 = vpop.f32.mrb[72].mxu0 }
 0x8f3   :  { %v6652_v61 = vpop.f32.mrb[73].mxu0  ;;  %v5174_v60 = vsel %vm819_vm3, %v4849_v14, -inf }
 0x8f4   :  { %5175 = vmax.xlane.f32.xlu0 %v5174_v60 }
 0x8f6   :  { %v5005_v4 = vpop.f32.mrb[74].mxu0 }
 0x8f7   :  { %v6662_v16 = vpop.f32.mrb[75].mxu0  ;;  %v5180_v7 = vsel %vm819_vm3, %v5005_v4, -inf }
 0x8f8   :  { %5181 = vmax.xlane.f32.xlu0 %v5180_v7 }
 0x8fa   :  { %v5161_v55 = vpop.f32.mrb[76].mxu0 }
 0x8fb   :  { %v6672_v11 = vpop.f32.mrb[77].mxu0  ;;  %v5186_v15 = vsel %vm819_vm3, %v5161_v55, -inf }
 0x8fc   :  { %5187 = vmax.xlane.f32.xlu0 %v5186_v15 }
 0x975   :  { %v5167_v12 = vpop.xlane.xlu0 %5166 }
 0x976   :  { %v5189_v27 = vsub.f32 %v7783_v2, %v5167_v12 }
 0x978   :  { %v5197_v31 = vmul.f32 1.442695, %v5189_v27 }
 0x979   :  { %v5170_v58 = vpop.xlane.xlu1 %5169 }
 0x97a   :  { %v5190_v45 = vsub.f32 %v4693_v54, %v5170_v58 }
 0x97c   :  { %v5199_v37 = vmul.f32 1.442695, %v5190_v45 }
 0x97d   :  { %v5173_v39 = vpop.xlane.xlu0 %5172 }
 0x97e   :  { %6887 = vpow2.f32 %v5199_v37  ;;  %v5191_v29 = vsub.f32 %v4771_v6, %v5173_v39 }
 0x980   :  { %v5201_v35 = vmul.f32 1.442695, %v5191_v29 }
 0x981   :  { %v5176_v41 = vpop.xlane.xlu0 %5175 }
 0x982   :  { %v5192_v20 = vsub.f32 %v4849_v14, %v5176_v41 }
 0x984   :  { %v5203_v18 = vmul.f32 1.442695, %v5192_v20 }
 0x985   :  { %v5182_v47 = vpop.xlane.xlu0 %5181 }
 0x986   :  { %6889 = vpow2.f32 %v5203_v18  ;;  %v5194_v50 = vsub.f32 %v5005_v4, %v5182_v47 }
 0x988   :  { %v6888_v53 = vpop.eup %6887  ;;  %v5207_v56 = vmul.f32 1.442695, %v5194_v50 }
 0x989   :  { %v5188_v17 = vpop.xlane.xlu0 %5187  ;;  %v5216_v5 = vsel %vm819_vm3, %v6888_v53, 0.0 }
 0x98a   :  { %6891 = vpow2.f32 %v5207_v56  ;;  %v5196_v19 = vsub.f32 %v5161_v55, %v5188_v17  ;;  %5217 = vadd.xlane.f32.xlu0 %v5216_v5  ;;  %v5861_v56 = vld [vmem:[%s7904_s2 + $0x30] sm:$0xff]  ;;  %v5862_v17 = vld [vmem:[%s7904_s2 + $0x38] sm:$0xff] }
 0x98c   :  { %v5211_v62 = vmul.f32 1.442695, %v5196_v19  ;;  %v6749_v19 = vpack.c.bf16 %v5862_v17, %v5861_v56 }
 0x98e   :  { %6893 = vpow2.f32 %v5211_v62 }
 0x98f   :  { %6895 = vpow2.f32 %v5197_v31 }
 0x990   :  { %v7801_v13 = vpop.eup %6889  ;;  %6897 = vpow2.f32 %v5201_v35 }
 0x991   :  { %v5222_v59 = vsel %vm819_vm3, %v7801_v13, 0.0 }
 0x992   :  { %5223 = vadd.xlane.f32.xlu0 %v5222_v59 }
 0x994   :  { %v7805_v38 = vpop.eup %6891 }
 0x995   :  { %v5228_v21 = vsel %vm819_vm3, %v7805_v38, 0.0 }
 0x996   :  { %5229 = vadd.xlane.f32.xlu0 %v5228_v21 }
 0x998   :  { %v7809_v23 = vpop.eup %6893 }
 0x999   :  { %v5234_v25 = vsel %vm819_vm3, %v7809_v23, 0.0  ;;  %v6896_v48 = vpop.eup %6895 }
 0x99a   :  { %5235 = vadd.xlane.f32.xlu0 %v5234_v25  ;;  %v5213_v51 = vsel %vm819_vm3, %v6896_v48, 0.0 }
 0x9b0   :  { %5329 = vrot.lane.b32.xlu0 %v7072_v24, %s6977_s30 }
 0x9b4   :  { %5557 = vrot.lane.b32.xlu0 %v7087_v30, %s6977_s30  ;;  %v6898_v30 = vpop.eup %6897 }
 0x9b5   :  { %v5219_v52 = vsel %vm819_vm3, %v6898_v30, 0.0 }
 0x9b8   :  { %5709 = vrot.lane.b32.xlu0 %v7097_v34, %s6977_s30 }
 0x9ba   :  { %v4927_v40 = vpop.f32.mrb[54].mxu1 }
 0x9bb   :  { %v6657_v33 = vpop.f32.mrb[55].mxu1  ;;  %v5177_v42 = vsel %vm819_vm3, %v4927_v40, -inf }
 0x9bc   :  { %5178 = vmax.xlane.f32.xlu1 %v5177_v42 }
 0x9be   :  { %v5083_v44 = vpop.f32.mrb[56].mxu1 }
 0x9bf   :  { %v6667_v46 = vpop.f32.mrb[57].mxu1  ;;  %v5183_v24 = vsel %vm819_vm3, %v5083_v44, -inf }
 0x9c0   :  { %5184 = vmax.xlane.f32.xlu1 %v5183_v24 }
 0x9c4   :  { %5214 = vadd.xlane.f32.xlu1 %v5213_v51  ;;  %v6176_v51 = vld [vmem:[%s7905_s3] ss:$0 sm:$0xff]  ;;  %s6978_s3 = smov [#allocation5]  }
 0x9c5   :  { %s6028_s13 = sshll.u32 %s6978_s3, 4  ;;  %s6029_s13 = int_to_ptr.vmem [resolvable:$true] %s6028_s13 }
 0x9c6   :  { %s6941_s14 = scalar_lea.vmem %s6029_s13, 1024  ;;  %p6946_p9 = scmp.lt.s32.totalorder %s6029_s13, %s6029_s13 }
 0x9c7   :  { %p6942_p8 = scmp.ne.s32.totalorder %s6029_s13, %s6941_s14  ;;  %p6947_p10 = scmp.lt.s32.totalorder %s6941_s14, %s6941_s14 }
 0x9c8   :  { %5220 = vadd.xlane.f32.xlu1 %v5219_v52 }
 0x9c9   :  { %p6948_p11 = por %p6947_p10, %p6946_p9 }
 0x9cb   :  { %p6949_p12 = pnand %p6948_p11, %p6942_p8 }
 0x9d9   :  { %5253 = vrot.lane.b32.xlu1 %v7067_v22, %s6977_s30 }
 0x9dd   :  { %5405 = vrot.lane.b32.xlu1 %v7077_v26, %s6977_s30 }
 0x9e1   :  { %5481 = vrot.lane.b32.xlu1 %v7082_v28, %s6977_s30 }
 0x9e5   :  { %5633 = vrot.lane.b32.xlu1 %v7092_v32, %s6977_s30 }
 0xa17   :  { %v5218_v34 = vpop.xlane.xlu0 %5217 }
 0xa18   :  { %6899 = vrcp.f32 %v5218_v34 }
 0xa1f   :  { %v5224_v3 = vpop.xlane.xlu0 %5223 }
 0xa22   :  { %v6900_v9 = vpop.eup %6899 }
 0xa23   :  { %v5230_v63 = vpop.xlane.xlu0 %5229  ;;  %v5246_v43 = vmul.f32 %v6900_v9, %v6888_v53 }
 0xa27   :  { %v5236_v2 = vpop.xlane.xlu0 %5235 }
 0xa2b   :  { %v5330_v49 = vpop.permute.xlu0 %5329 }
 0xa2c   :  { %6679 = vmatpush3.msra.mxu0 %v5330_v49 }
 0xa2d   :  { %6681 = vmatmul.mubr.msk.f32.vlgmr.msra.gmra.mrb[78].mxu0 %vm819_vm3, %v5246_v43  ;;  %6688 = vmatprep.subr.mxu0 %v6970_v0 }
 0xa2e   :  { %6690 = vmatprep.mubr.msk.f32.mxu0 %vm6971_vm1, %v6970_v0 }
 0xa2f   :  { %v5558_v37 = vpop.permute.xlu0 %5557 }
 0xa33   :  { %v5710_v62 = vpop.permute.xlu0 %5709 }
 0xa49   :  { %v5179_v22 = vpop.xlane.xlu1 %5178 }
 0xa4a   :  { %v5193_v26 = vsub.f32 %v4927_v40, %v5179_v22 }
 0xa4c   :  { %v5205_v28 = vmul.f32 1.442695, %v5193_v26 }
 0xa4d   :  { %v5185_v32 = vpop.xlane.xlu1 %5184 }
 0xa4e   :  { %6901 = vpow2.f32 %v5205_v28  ;;  %v5195_v54 = vsub.f32 %v5083_v44, %v5185_v32 }
 0xa50   :  { %v5209_v57 = vmul.f32 1.442695, %v5195_v54 }
 0xa51   :  { %v5215_v1 = vpop.xlane.xlu1 %5214 }
 0xa52   :  { %6903 = vpow2.f32 %v5209_v57 }
 0xa53   :  { %6905 = vrcp.f32 %v5215_v1 }
 0xa54   :  { %6907 = vrcp.f32 %v5224_v3 }
 0xa55   :  { %v5221_v6 = vpop.xlane.xlu1 %5220 }
 0xa56   :  { %6909 = vrcp.f32 %v5221_v6 }
 0xa57   :  { %6911 = vrcp.f32 %v5230_v63 }
 0xa58   :  { %v6902_v8 = vpop.eup %6901  ;;  %6913 = vrcp.f32 %v5236_v2 }
 0xa59   :  { %v5254_v10 = vpop.permute.xlu1 %5253  ;;  %v5225_v14 = vsel %vm819_vm3, %v6902_v8, 0.0 }
 0xa5a   :  { %5226 = vadd.xlane.f32.xlu1 %v5225_v14  ;;  %6674 = vmatpush3.msra.mxu1 %v5254_v10 }
 0xa5b   :  { %6683 = vmatprep.subr.mxu1 %v6970_v0 }
 0xa5c   :  { %v6904_v61 = vpop.eup %6903 }
 0xa5d   :  { %v6906_v60 = vpop.eup %6905  ;;  %v5406_v4 = vpop.permute.xlu1 %5405  ;;  %v5231_v16 = vsel %vm819_vm3, %v6904_v61, 0.0 }
 0xa5e   :  { %v6908_v7 = vpop.eup %6907  ;;  %v5245_v55 = vmul.f32 %v6906_v60, %v6896_v48  ;;  %5232 = vadd.xlane.f32.xlu1 %v5231_v16 }
 0xa5f   :  { %v5248_v15 = vmul.f32 %v6908_v7, %v7801_v13 }
 0xa60   :  { %v6910_v11 = vpop.eup %6909  ;;  %6676 = vmatmul.mubr.msk.f32.vlgmr.msra.gmra.mrb[58].mxu1 %vm819_vm3, %v5245_v55 }
 0xa61   :  { %v5247_v12 = vmul.f32 %v6910_v11, %v6898_v30  ;;  %6684 = vmatpush3.msra.mxu1 %v5406_v4  ;;  %v5482_v58 = vpop.permute.xlu1 %5481  ;;  %6685 = vmatprep.mubr.msk.f32.mxu1 %vm6971_vm1, %v6970_v0  ;;  %v6912_v45 = vpop.eup %6911 }
 0xa62   :  { %6689 = vmatpush3.msra.mxu0 %v5482_v58  ;;  %6693 = vmatprep.subr.mxu1 %v6970_v0  ;;  %v5250_v39 = vmul.f32 %v6912_v45, %v7805_v38  ;;  %v6914_v47 = vpop.eup %6913 }
 0xa63   :  { %6691 = vmatmul.mubr.msk.f32.vlgmr.msra.gmra.mrb[80].mxu0 %vm819_vm3, %v5248_v15  ;;  %6698 = vmatprep.subr.mxu0 %v6970_v0  ;;  %v5252_v50 = vmul.f32 %v6914_v47, %v7809_v23 }
 0xa64   :  { %6686 = vmatmul.mubr.msk.f32.vlgmr.msra.gmra.mrb[60].mxu1 %vm819_vm3, %v5247_v12  ;;  %6700 = vmatprep.mubr.msk.f32.mxu0 %vm6971_vm1, %v6970_v0 }
 0xa65   :  { %6694 = vmatpush3.msra.mxu1 %v5558_v37  ;;  %v5634_v41 = vpop.permute.xlu1 %5633  ;;  %6695 = vmatprep.mubr.msk.f32.mxu1 %vm6971_vm1, %v6970_v0 }
 0xa66   :  { %6699 = vmatpush3.msra.mxu0 %v5634_v41  ;;  %6703 = vmatprep.subr.mxu1 %v6970_v0 }
 0xa67   :  { %6701 = vmatmul.mubr.msk.f32.vlgmr.msra.gmra.mrb[82].mxu0 %vm819_vm3, %v5250_v39  ;;  %6708 = vmatprep.subr.mxu0 %v6970_v0 }
 0xa68   :  { %6710 = vmatprep.mubr.msk.f32.mxu0 %vm6971_vm1, %v6970_v0 }
 0xa6f   :  { %5785 = vrot.lane.b32.xlu1 %v7103_v36, %s6977_s30 }
 0xae7   :  { %v5227_v20 = vpop.xlane.xlu1 %5226 }
 0xae8   :  { %6915 = vrcp.f32 %v5227_v20 }
 0xaeb   :  { %v5233_v18 = vpop.xlane.xlu1 %5232 }
 0xaec   :  { %6917 = vrcp.f32 %v5233_v18 }
 0xaef   :  { %v5786_v53 = vpop.permute.xlu1 %5785 }
 0xaf0   :  { %6709 = vmatpush3.msra.mxu0 %v5786_v53 }
 0xaf1   :  { %6711 = vmatmul.mubr.msk.f32.vlgmr.msra.gmra.mrb[84].mxu0 %vm819_vm3, %v5252_v50 }
 0xaf2   :  { %v6916_v36 = vpop.eup %6915 }
 0xaf3   :  { %v5249_v5 = vmul.f32 %v6916_v36, %v6902_v8 }
 0xaf5   :  { %6696 = vmatmul.mubr.msk.f32.vlgmr.msra.gmra.mrb[62].mxu1 %vm819_vm3, %v5249_v5 }
 0xaf6   :  { %v6918_v13 = vpop.eup %6917  ;;  %6704 = vmatpush3.msra.mxu1 %v5710_v62  ;;  %6705 = vmatprep.mubr.msk.f32.mxu1 %vm6971_vm1, %v6970_v0 }
 0xaf7   :  { %v5251_v59 = vmul.f32 %v6918_v13, %v6904_v61  ;;  %6750 = vmatprep.subr.bf16.mxu1 %v6749_v19 }
 0xaf9   :  { %6706 = vmatmul.mubr.msk.f32.vlgmr.msra.gmra.mrb[64].mxu1 %vm819_vm3, %v5251_v59 }
 0xafa   :  { %6752 = vmatpush3.bf16.msra.mxu1 %v6749_v19 }
 0xb00   :  { %v5401_v38 = vpop.f32.mrb[78].mxu0 }
 0xb01   :  { %v6682_v21 = vpop.f32.mrb[79].mxu0 }
 0xb33   :  { %v5325_v23 = vpop.f32.mrb[58].mxu1 }
 0xb34   :  { %v6677_v25 = vpop.f32.mrb[59].mxu1  ;;  %6717 = vmatprep.mubr.msk.f32.mxu1 %vm197_vm2, %v5325_v23 }
 0xb35   :  { %6718 = vmatmul.mubr.msk.f32.vlgmr.msra.gmra.mrb[38].mxu1 %vm197_vm2, %v5401_v38 }
 0xb36   :  { %v5553_v27 = vpop.f32.mrb[80].mxu0 }
 0xb37   :  { %v5477_v31 = vpop.f32.mrb[60].mxu1  ;;  %v6692_v29 = vpop.f32.mrb[81].mxu0 }
 0xb38   :  { %v6687_v35 = vpop.f32.mrb[61].mxu1  ;;  %6720 = vmatprep.mubr.msk.f32.mxu1 %vm197_vm2, %v5477_v31 }
 0xb39   :  { %6721 = vmatmul.mubr.msk.f32.gmra.mrb[40].mxu1 %vm197_vm2, %v5553_v27 }
 0xb3a   :  { %v5705_v0 = vpop.f32.mrb[82].mxu0 }
 0xb3b   :  { %v6702_v40 = vpop.f32.mrb[83].mxu0 }
 0xbc4   :  { %v5857_v33 = vpop.f32.mrb[84].mxu0 }
 0xbc5   :  { %v6712_v42 = vpop.f32.mrb[85].mxu0 }
 0xbc8   :  { %v5629_v44 = vpop.f32.mrb[62].mxu1 }
 0xbc9   :  { %v6697_v46 = vpop.f32.mrb[63].mxu1  ;;  %6723 = vmatprep.mubr.msk.f32.mxu1 %vm197_vm2, %v5629_v44 }
 0xbca   :  { %6724 = vmatmul.mubr.msk.f32.gmra.mrb[42].mxu1 %vm197_vm2, %v5705_v0 }
 0xbcc   :  { %v5781_v24 = vpop.f32.mrb[64].mxu1 }
 0xbcd   :  { %v6707_v48 = vpop.f32.mrb[65].mxu1  ;;  %6726 = vmatprep.mubr.msk.f32.mxu1 %vm197_vm2, %v5781_v24 }
 0xbce   :  { %6727 = vmatmul.mubr.msk.f32.gmra.mrb[44].mxu1 %vm197_vm2, %v5857_v33 }
 0xc08   :  { %v6719_v30 = vpop.f32.mrb[38].mxu1 }
 0xc09   :  { %v6008_v52 = vadd.f32 %v6719_v30, %v6176_v51  ;;  %v5953_v34 = vpop.f32.mrb[39].mxu1 }
 0xc0a   :  { %v6007_v3 = vadd.f32 %v6176_v51, %v5953_v34 }
 0xc0b   :  { %6016 = vst.msk [vmem:[#allocation5 + $0x8] sm:$0xff] %vm48_vm0, %v6008_v52 }
 0xc0c   :  { %6015 = vst.msk [vmem:[#allocation5] sm:$0xff] %vm48_vm0, %v6007_v3  ;;  %v6722_v63 = vpop.f32.mrb[40].mxu1 }
 0xc0d   :  { %v6010_v2 = vadd.f32 %v6722_v63, %v6176_v51  ;;  %v5963_v9 = vpop.f32.mrb[41].mxu1 }
 0xc0e   :  { %v6009_v43 = vadd.f32 %v6176_v51, %v5963_v9 }
 0xc0f   :  { %6018 = vst.msk [vmem:[#allocation5 + $0x18] sm:$0xff] %vm48_vm0, %v6010_v2 }
 0xc10   :  { %6017 = vst.msk [vmem:[#allocation5 + $0x10] sm:$0xff] %vm48_vm0, %v6009_v43 }
 0xc9d   :  { %v6725_v49 = vpop.f32.mrb[42].mxu1 }
 0xc9e   :  { %v6012_v22 = vadd.f32 %v6725_v49, %v6176_v51  ;;  %v5973_v26 = vpop.f32.mrb[43].mxu1 }
 0xc9f   :  { %v6011_v28 = vadd.f32 %v6176_v51, %v5973_v26 }
 0xca0   :  { %6020 = vst.msk [vmem:[#allocation5 + $0x28] sm:$0xff] %vm48_vm0, %v6012_v22 }
 0xca1   :  { %6019 = vst.msk [vmem:[#allocation5 + $0x20] sm:$0xff] %vm48_vm0, %v6011_v28  ;;  %v6728_v32 = vpop.f32.mrb[44].mxu1 }
 0xca2   :  { %v6014_v54 = vadd.f32 %v6728_v32, %v6176_v51  ;;  %v5983_v57 = vpop.f32.mrb[45].mxu1 }
 0xca3   :  { %v6013_v1 = vadd.f32 %v6176_v51, %v5983_v57 }
 0xca4   :  { %6022 = vst.msk [vmem:[#allocation5 + $0x38] sm:$0xff] %vm48_vm0, %v6014_v54 }
 0xca5   :  { %6021 = vst.msk [vmem:[#allocation5 + $0x30] sm:$0xff] %vm48_vm0, %v6013_v1 }
 0xca6   :  { %6952 = shalt.err (!%p6949_p12)
}
 0xca7   :  { %s6953_s17 = scalar_lea.hbm %s7906_s4, 1024 }
 0xca8   :  { %p6954_p13 = scmp.ne.s32.totalorder %s7906_s4, %s6953_s17  ;;  %p6957_p0 = scmp.lt.u32.totalorder %s6953_s17, %s7906_s4 }
 0xcaa   :  { %p6959_p1 = pnand %p6957_p0, %p6954_p13 }
 0xcac   :  { %6962 = shalt.err (!%p6959_p1)
}
 0xcad   :  { %s6979_s21 = smov 128   ;;  %s6980_s22 = smov 8  }
 0xcae   :  { %6034 = dma.vmem_to_hbm [thread:$0]  %s6029_s13, 1024, %s7906_s4, [#allocation4], %s6979_s21, %s6979_s21, %s6980_s22  }
 0xcaf   :  { %6965 = dma.done.wait [#allocation4], 1024  }
 0xcb0   :  { %6966 = vsyncadd [#allocation4], 4294966272 }
 0xcb1   :  { %6038 = vsyncpa [#allocation3], 1 }
 0xcb2   :  { %6039 = vsyncpa [#allocation4], 1 }

</bundles_post_ra>
